<compile_context>
chip_gen: v6e
topology: v6e:2x2x1
jax: 0.10.0
libtpu: 0.0.40
codegen_flags: <defaults>
</compile_context>

<pallas_src>
import jax
import jax.numpy as jnp
from jax.experimental import pallas as pl
from jax.experimental.pallas import tpu as pltpu


def _round_up(x, m):
    return (x + m - 1) // m * m


def _softplus(x):
    # torch.nn.Softplus(beta=1, threshold=20)
    return jnp.where(x > 20.0, x, jnp.log1p(jnp.exp(jnp.minimum(x, 20.0))))


def decoder_kernel(x_ref, w_in_ref, b_in_ref, w1_ref, b1_ref, alpha_ref,
                   w2_ref, b2_ref, w_out_ref, b_out_ref, o_ref):
    bf16 = jnp.bfloat16
    # x already bf16 (cast in the wrapper); MXU bf16 matmul, f32 accumulate.
    h = jnp.dot(x_ref[...], w_in_ref[...],
                preferred_element_type=jnp.float32) + b_in_ref[...]   # [tm, C]

    def res_block(h, w1, b1, alpha, w2, b2):
        # LayerNorm (eps=1e-5); affine already folded into w1/b1 offline.
        # One-pass variance: var = E[h^2] - E[h]^2 (one fewer XLU reduction).
        mean = jnp.mean(h, axis=-1, keepdims=True)
        msq = jnp.mean(h * h, axis=-1, keepdims=True)
        var = jnp.maximum(msq - mean * mean, 0.0)
        hn = (h - mean) * jax.lax.rsqrt(var + 1e-5)
        # Linear -> PReLU (scalar alpha from SMEM) -> Linear, residual add.
        t = jnp.dot(hn.astype(bf16), w1, preferred_element_type=jnp.float32) + b1
        t = jnp.where(t >= 0.0, t, alpha * t)
        t = jnp.dot(t.astype(bf16), w2, preferred_element_type=jnp.float32) + b2
        return h + t

    n_blocks = w1_ref.shape[0]                 # static (n_layers - 1)
    if n_blocks <= 4:
        # Shallow decoder: static unroll (full LLO visibility).
        for l in range(n_blocks):
            h = res_block(h, w1_ref[l], b1_ref[l], alpha_ref[l],
                          w2_ref[l], b2_ref[l])
    else:
        # Deep decoder: bounded loop body, dynamic leading-axis ref indexing.
        h = jax.lax.fori_loop(
            0, n_blocks,
            lambda l, h: res_block(h, w1_ref[l], b1_ref[l], alpha_ref[l],
                                   w2_ref[l], b2_ref[l]),
            h)

    y = jnp.dot(h.astype(bf16), w_out_ref[...],
                preferred_element_type=jnp.float32) + b_out_ref[...]
    # bf16 store -> half the HBM writeback of the padded output block.
    o_ref[...] = (_softplus(y) + 1e-6).astype(o_ref.dtype)


def _pack_params(params):
    """Fold LayerNorm affine into w1/b1, cast matmul weights to bf16 and pad
    the output feature dim to a lane-dense multiple of 128."""
    ln_w, ln_b = params["ln_w"], params["ln_b"]          # (NB, 1, C)
    w1, b1 = params["w1"], params["b1"]                  # (NB, C, C) / (NB, 1, C)
    # (hn*g + b) @ W1 + b1 == hn @ (diag(g) @ W1) + (b @ W1 + b1)
    w1_eff = jnp.transpose(ln_w, (0, 2, 1)) * w1         # scale rows of W1
    b1_eff = jnp.einsum("lic,lcd->lid", ln_b, w1) + b1

    F = params["w_out"].shape[1]
    F_pad = _round_up(F, 128)
    w_out = jnp.pad(params["w_out"], ((0, 0), (0, F_pad - F)))
    b_out = jnp.pad(params["b_out"], ((0, 0), (0, F_pad - F)))

    bf16 = jnp.bfloat16
    packed = dict(
        w_in=params["w_in"].astype(bf16),
        b_in=params["b_in"].astype(jnp.float32),
        w1=w1_eff.astype(bf16),
        b1=b1_eff.astype(jnp.float32),
        alpha=params["alpha"].reshape(-1).astype(jnp.float32),   # (NB,) -> SMEM
        w2=params["w2"].astype(bf16),
        b2=params["b2"].astype(jnp.float32),
        w_out=w_out.astype(bf16),
        b_out=b_out.astype(jnp.float32),
    )
    return packed, F


def _vmem_tile_bytes(shape, itemsize):
    """Rough VMEM footprint of a ref: (8, 128) tiling on the last two dims."""
    if len(shape) == 1:
        return _round_up(shape[0] * itemsize, 512)
    lead = 1
    for s in shape[:-2]:
        lead *= s
    return lead * _round_up(shape[-2], 8) * _round_up(shape[-1], 128) * itemsize


def decoder_forward(z, params, dim_latent_noi=None, tm=1024,
                    out_dtype=jnp.bfloat16):
    """z: [B, D, N, T] float32 -> [B, n_stft, N, T] float32."""
    if dim_latent_noi is not None:
        # glue: z[:, dim_latent_noi:, -1, :] = 0.0
        z = z.at[:, dim_latent_noi:, -1, :].set(0.0)

    B, D, N, T = z.shape
    M = B * N * T
    # b d n t -> (b n t) d, pre-cast to bf16 (halves x DMA, removes in-kernel
    # cast). XLA fuses set/transpose/reshape/cast into one layout copy.
    # TODO(synk): could consume z directly with a 2-D grid over (B*N, T) to
    # remove this HBM->HBM copy entirely.
    x = jnp.transpose(z, (0, 2, 3, 1)).reshape(M, D).astype(jnp.bfloat16)

    kp, F = _pack_params(params)
    C = kp["w_in"].shape[1]
    F_pad = kp["w_out"].shape[1]
    NB = kp["w1"].shape[0]

    # Row tile: large (amortizes ~0.35us/step overhead, fills MXU M dim), but
    # capped at ceil(M/2) so the "parallel" row grid always has >= 2 steps and
    # both v7x TensorCores get work.
    tm = _round_up(max(tm, 8), 8)
    tm = min(tm, max(8, _round_up(pl.cdiv(M, 2), 8)))
    M_pad = _round_up(M, tm)
    if M_pad != M:
        x = jnp.pad(x, ((0, M_pad - M), (0, 0)))
    grid = (M_pad // tm,)

    out_isz = jnp.dtype(out_dtype).itemsize
    # VMEM budget from actual footprint (weights single-buffered, activation
    # tiles double-buffered, headroom for f32 intermediates + scratch);
    # clamp to <= 32 MiB so it is safe on v7x (64 MiB physical per TC).
    weight_bytes = (_vmem_tile_bytes((D, C), 2) + _vmem_tile_bytes((1, C), 4)
                    + 2 * _vmem_tile_bytes((NB, C, C), 2)
                    + 2 * _vmem_tile_bytes((NB, 1, C), 4)
                    + _vmem_tile_bytes((C, F_pad), 2)
                    + _vmem_tile_bytes((1, F_pad), 4))
    act_bytes = 2 * (_vmem_tile_bytes((tm, D), 2)
                     + _vmem_tile_bytes((tm, F_pad), out_isz))
    scratch_bytes = 4 * _vmem_tile_bytes((tm, C), 4)
    vmem_limit = int(min(max(weight_bytes + act_bytes + scratch_bytes + (8 << 20),
                             16 << 20), 32 << 20))

    flops = 2 * M_pad * (D * C + 2 * NB * C * C + C * F_pad)
    cost = pl.CostEstimate(
        flops=flops,
        transcendentals=M_pad * (F_pad + NB),
        bytes_accessed=x.size * 2 + M_pad * F_pad * out_isz + weight_bytes)

    # Grid-invariant operands: single-buffer (constant index_map -> no benefit
    # from double-buffering; halves their VMEM residency).
    inv = dict(pipeline_mode=pl.Buffered(1))

    out = pl.pallas_call(
        decoder_kernel,
        out_shape=jax.ShapeDtypeStruct((M_pad, F_pad), out_dtype),
        grid_spec=pltpu.PrefetchScalarGridSpec(
            num_scalar_prefetch=0,
            grid=grid,
            in_specs=[
                pl.BlockSpec((tm, D), lambda i: (i, 0)),                   # x rows (bf16)
                pl.BlockSpec((D, C), lambda i: (0, 0), **inv),             # w_in (bf16)
                pl.BlockSpec((1, C), lambda i: (0, 0), **inv),             # b_in
                pl.BlockSpec((NB, C, C), lambda i: (0, 0, 0), **inv),      # w1' (bf16)
                pl.BlockSpec((NB, 1, C), lambda i: (0, 0, 0), **inv),      # b1'
                pl.BlockSpec(memory_space=pltpu.MemorySpace.SMEM),         # alpha (NB,)
                pl.BlockSpec((NB, C, C), lambda i: (0, 0, 0), **inv),      # w2 (bf16)
                pl.BlockSpec((NB, 1, C), lambda i: (0, 0, 0), **inv),      # b2
                pl.BlockSpec((C, F_pad), lambda i: (0, 0), **inv),         # w_out (bf16)
                pl.BlockSpec((1, F_pad), lambda i: (0, 0), **inv),         # b_out
            ],
            out_specs=pl.BlockSpec((tm, F_pad), lambda i: (i, 0)),         # lane-dense
        ),
        compiler_params=pltpu.CompilerParams(
            dimension_semantics=("parallel",),
            vmem_limit_bytes=vmem_limit,
        ),
        cost_estimate=cost,
    )(x, kp["w_in"], kp["b_in"], kp["w1"], kp["b1"], kp["alpha"],
      kp["w2"], kp["b2"], kp["w_out"], kp["b_out"])

    out = out[:M, :F].astype(jnp.float32)
    return out.reshape(B, N, T, F).transpose(0, 3, 1, 2)   # b n t f -> b f n t


def init_params(key, dim_latent, io_ch, n_stft, n_layers):
    nb = n_layers - 1
    keys = jax.random.split(key, 10)
    s = 0.05
    return dict(
        w_in=jax.random.normal(keys[0], (dim_latent, io_ch), jnp.float32) * s,
        b_in=jax.random.normal(keys[1], (1, io_ch), jnp.float32) * s,
        # non-trivial LN affine / PReLU slopes so the folding & SMEM paths are exercised
        ln_w=1.0 + 0.1 * jax.random.normal(keys[2], (nb, 1, io_ch), jnp.float32),
        ln_b=0.05 * jax.random.normal(keys[3], (nb, 1, io_ch), jnp.float32),
        w1=jax.random.normal(keys[4], (nb, io_ch, io_ch), jnp.float32) * s,
        b1=jax.random.normal(keys[5], (nb, 1, io_ch), jnp.float32) * s,
        alpha=0.25 + 0.05 * jnp.arange(nb, dtype=jnp.float32).reshape(nb, 1, 1),
        w2=jax.random.normal(keys[6], (nb, io_ch, io_ch), jnp.float32) * s,
        b2=jax.random.normal(keys[7], (nb, 1, io_ch), jnp.float32) * s,
        w_out=jax.random.normal(keys[8], (io_ch, n_stft), jnp.float32) * s,
        b_out=jax.random.normal(keys[9], (1, n_stft), jnp.float32) * s,
    )


def reference_forward(z, params, dim_latent_noi=None):
    """Pure-JAX f32 reference mirroring the PyTorch forward (unfolded params)."""
    if dim_latent_noi is not None:
        z = z.at[:, dim_latent_noi:, -1, :].set(0.0)
    x = jnp.transpose(z, (0, 2, 3, 1))                     # b d n t -> b n t d
    h = x @ params["w_in"] + params["b_in"][0]
    for l in range(params["ln_w"].shape[0]):
        mean = h.mean(-1, keepdims=True)
        var = ((h - mean) ** 2).mean(-1, keepdims=True)
        hn = (h - mean) / jnp.sqrt(var + 1e-5)
        hn = hn * params["ln_w"][l, 0] + params["ln_b"][l, 0]
        t = hn @ params["w1"][l] + params["b1"][l, 0]
        a = params["alpha"][l, 0, 0]
        t = jnp.where(t >= 0, t, a * t)
        t = t @ params["w2"][l] + params["b2"][l, 0]
        h = h + t
    y = _softplus(h @ params["w_out"] + params["b_out"][0]) + 1e-6
    return jnp.transpose(y, (0, 3, 1, 2))                  # b n t f -> b f n t


if __name__ == "__main__":
    key = jax.random.PRNGKey(0)
    k_z, k_p, k_z2, k_p2 = jax.random.split(key, 4)

    # Shapes consistent with the module's forward: z [B, D, N, T]
    B, N, T = 2, 8, 18
    dim_latent = 8
    io_ch = 32
    n_fft = 16
    n_stft = n_fft // 2 + 1                                # = 9
    dim_latent_noi = 5

    # --- Config 1: n_layers=3 (static unroll), default tm.
    # M = 288 rows -> tm capped to 144 -> exactly 2 (even) grid steps.
    n_layers = 3
    z = jax.random.normal(k_z, (B, dim_latent, N, T), jnp.float32)
    params = init_params(k_p, dim_latent, io_ch, n_stft, n_layers)
    y = jax.block_until_ready(
        decoder_forward(z, params, dim_latent_noi=dim_latent_noi))
    assert y.shape == (B, n_stft, N, T)
    y_ref = reference_forward(z, params, dim_latent_noi=dim_latent_noi)
    err1 = float(jnp.max(jnp.abs(y - y_ref)))
    # bf16 matmuls + bf16 output store (f32 accumulate) -> loose tolerance
    assert jnp.allclose(y, y_ref, atol=2e-2, rtol=2e-2), f"config1 mismatch {err1}"

    # --- Config 2: n_layers=6 (fori_loop path, NB=5) + tm=104 so the row
    # padding path is exercised (288 rows -> 312, 3 grid steps).
    n_layers2 = 6
    z2 = jax.random.normal(k_z2, (B, dim_latent, N, T), jnp.float32)
    params2 = init_params(k_p2, dim_latent, io_ch, n_stft, n_layers2)
    y2 = jax.block_until_ready(decoder_forward(z2, params2, tm=104))
    assert y2.shape == (B, n_stft, N, T)
    y2_ref = reference_forward(z2, params2)
    err2 = float(jnp.max(jnp.abs(y2 - y2_ref)))
    assert jnp.allclose(y2, y2_ref, atol=2e-2, rtol=2e-2), f"config2 mismatch {err2}"

    print("KERNEL_OK")
</pallas_src>

<mosaic_0001>
module attributes {stable_mosaic.version = 11 : i64} {
  func.func @decoder_kernel(%arg0: i32, %arg1: memref<144x8xbf16, #tpu.memory_space<vmem>>, %arg2: memref<8x32xbf16, #tpu.memory_space<vmem>>, %arg3: memref<1x32xf32, #tpu.memory_space<vmem>>, %arg4: memref<2x32x32xbf16, #tpu.memory_space<vmem>>, %arg5: memref<2x1x32xf32, #tpu.memory_space<vmem>>, %arg6: memref<2xf32, #tpu.memory_space<smem>>, %arg7: memref<2x32x32xbf16, #tpu.memory_space<vmem>>, %arg8: memref<2x1x32xf32, #tpu.memory_space<vmem>>, %arg9: memref<32x128xbf16, #tpu.memory_space<vmem>>, %arg10: memref<1x128xf32, #tpu.memory_space<vmem>>, %arg11: memref<144x128xbf16, #tpu.memory_space<vmem>>) attributes {dimension_semantics = [#tpu.dimension_semantics<parallel>], iteration_bounds = array<i64: 2>, scalar_prefetch = 0 : i64, scratch_operands = 0 : i64, tpu.core_type = #tpu.core_type<tc>, window_params = [{transform_indices = @transform_0, window_bounds = array<i64: 144, 8>}, {pipeline_mode = #tpu.pipeline_mode<synchronous>, transform_indices = @transform_1, window_bounds = array<i64: 8, 32>}, {pipeline_mode = #tpu.pipeline_mode<synchronous>, transform_indices = @transform_2, window_bounds = array<i64: 1, 32>}, {pipeline_mode = #tpu.pipeline_mode<synchronous>, transform_indices = @transform_3, window_bounds = array<i64: 2, 32, 32>}, {pipeline_mode = #tpu.pipeline_mode<synchronous>, transform_indices = @transform_4, window_bounds = array<i64: 2, 1, 32>}, {transform_indices = @transform_5, window_bounds = array<i64: 2>}, {pipeline_mode = #tpu.pipeline_mode<synchronous>, transform_indices = @transform_6, window_bounds = array<i64: 2, 32, 32>}, {pipeline_mode = #tpu.pipeline_mode<synchronous>, transform_indices = @transform_7, window_bounds = array<i64: 2, 1, 32>}, {pipeline_mode = #tpu.pipeline_mode<synchronous>, transform_indices = @transform_8, window_bounds = array<i64: 32, 128>}, {pipeline_mode = #tpu.pipeline_mode<synchronous>, transform_indices = @transform_9, window_bounds = array<i64: 1, 128>}, {transform_indices = @transform_10, window_bounds = array<i64: 144, 128>}]} {
    %c0 = arith.constant 0 : index
    %c0_0 = arith.constant 0 : index
    %0 = vector.load %arg1[%c0, %c0_0] : memref<144x8xbf16, #tpu.memory_space<vmem>>, vector<144x8xbf16>
    %c0_1 = arith.constant 0 : index
    %c0_2 = arith.constant 0 : index
    %1 = vector.load %arg2[%c0_1, %c0_2] : memref<8x32xbf16, #tpu.memory_space<vmem>>, vector<8x32xbf16>
    %cst = arith.constant dense<0.000000e+00> : vector<144x32xf32>
    %2 = tpu.matmul %0, %1, %cst {dimension_numbers = #tpu.dot_dimension_numbers<[1], [0], [0], [1], [0, 0, 1, 1], [], []>} : vector<144x8xbf16>, vector<8x32xbf16>, vector<144x32xf32> -> vector<144x32xf32>
    %c0_3 = arith.constant 0 : index
    %c0_4 = arith.constant 0 : index
    %3 = vector.load %arg3[%c0_3, %c0_4] : memref<1x32xf32, #tpu.memory_space<vmem>>, vector<1x32xf32>
    %4 = vector.broadcast %3 : vector<1x32xf32> to vector<144x32xf32>
    %5 = arith.addf %2, %4 : vector<144x32xf32>
    %c0_5 = arith.constant 0 : index
    %c0_6 = arith.constant 0 : index
    %c0_7 = arith.constant 0 : index
    %6 = vector.load %arg4[%c0_5, %c0_6, %c0_7] : memref<2x32x32xbf16, #tpu.memory_space<vmem>>, vector<1x32x32xbf16>
    %7 = vector.shape_cast %6 : vector<1x32x32xbf16> to vector<32x32xbf16>
    %c0_8 = arith.constant 0 : index
    %c0_9 = arith.constant 0 : index
    %c0_10 = arith.constant 0 : index
    %8 = vector.load %arg5[%c0_8, %c0_9, %c0_10] : memref<2x1x32xf32, #tpu.memory_space<vmem>>, vector<1x1x32xf32>
    %9 = vector.shape_cast %8 : vector<1x1x32xf32> to vector<1x32xf32>
    %c0_11 = arith.constant 0 : index
    %10 = memref.load %arg6[%c0_11] : memref<2xf32, #tpu.memory_space<smem>>
    %c0_12 = arith.constant 0 : index
    %c0_13 = arith.constant 0 : index
    %c0_14 = arith.constant 0 : index
    %11 = vector.load %arg7[%c0_12, %c0_13, %c0_14] : memref<2x32x32xbf16, #tpu.memory_space<vmem>>, vector<1x32x32xbf16>
    %12 = vector.shape_cast %11 : vector<1x32x32xbf16> to vector<32x32xbf16>
    %c0_15 = arith.constant 0 : index
    %c0_16 = arith.constant 0 : index
    %c0_17 = arith.constant 0 : index
    %13 = vector.load %arg8[%c0_15, %c0_16, %c0_17] : memref<2x1x32xf32, #tpu.memory_space<vmem>>, vector<1x1x32xf32>
    %14 = vector.shape_cast %13 : vector<1x1x32xf32> to vector<1x32xf32>
    %cst_18 = arith.constant dense<0.000000e+00> : vector<144xf32>
    %15 = vector.multi_reduction <add>, %5, %cst_18 [1] : vector<144x32xf32> to vector<144xf32>
    %16 = vector.shape_cast %15 : vector<144xf32> to vector<144x1xf32>
    %cst_19 = arith.constant 3.200000e+01 : f32
    %17 = vector.broadcast %cst_19 : f32 to vector<144x1xf32>
    %18 = arith.divf %16, %17 : vector<144x1xf32>
    %19 = arith.mulf %5, %5 : vector<144x32xf32>
    %cst_20 = arith.constant dense<0.000000e+00> : vector<144xf32>
    %20 = vector.multi_reduction <add>, %19, %cst_20 [1] : vector<144x32xf32> to vector<144xf32>
    %21 = vector.shape_cast %20 : vector<144xf32> to vector<144x1xf32>
    %cst_21 = arith.constant 3.200000e+01 : f32
    %22 = vector.broadcast %cst_21 : f32 to vector<144x1xf32>
    %23 = arith.divf %21, %22 : vector<144x1xf32>
    %24 = arith.mulf %18, %18 : vector<144x1xf32>
    %25 = arith.subf %23, %24 : vector<144x1xf32>
    %cst_22 = arith.constant 0.000000e+00 : f32
    %26 = vector.broadcast %cst_22 : f32 to vector<144x1xf32>
    %27 = arith.maximumf %25, %26 : vector<144x1xf32>
    %28 = vector.broadcast %18 : vector<144x1xf32> to vector<144x32xf32>
    %29 = arith.subf %5, %28 : vector<144x32xf32>
    %cst_23 = arith.constant 9.99999974E-6 : f32
    %30 = vector.broadcast %cst_23 : f32 to vector<144x1xf32>
    %31 = arith.addf %27, %30 : vector<144x1xf32>
    %32 = math.rsqrt %31 : vector<144x1xf32>
    %33 = vector.broadcast %32 : vector<144x1xf32> to vector<144x32xf32>
    %34 = arith.mulf %29, %33 : vector<144x32xf32>
    %35 = arith.truncf %34 : vector<144x32xf32> to vector<144x32xbf16>
    %cst_24 = arith.constant dense<0.000000e+00> : vector<144x32xf32>
    %36 = tpu.matmul %35, %7, %cst_24 {dimension_numbers = #tpu.dot_dimension_numbers<[1], [0], [0], [1], [0, 0, 1, 1], [], []>} : vector<144x32xbf16>, vector<32x32xbf16>, vector<144x32xf32> -> vector<144x32xf32>
    %37 = vector.broadcast %9 : vector<1x32xf32> to vector<144x32xf32>
    %38 = arith.addf %36, %37 : vector<144x32xf32>
    %cst_25 = arith.constant 0.000000e+00 : f32
    %39 = vector.broadcast %cst_25 : f32 to vector<144x32xf32>
    %40 = arith.cmpf oge, %38, %39 : vector<144x32xf32>
    %41 = vector.broadcast %10 : f32 to vector<144x32xf32>
    %42 = arith.mulf %41, %38 : vector<144x32xf32>
    %43 = arith.select %40, %38, %42 : vector<144x32xi1>, vector<144x32xf32>
    %44 = arith.truncf %43 : vector<144x32xf32> to vector<144x32xbf16>
    %cst_26 = arith.constant dense<0.000000e+00> : vector<144x32xf32>
    %45 = tpu.matmul %44, %12, %cst_26 {dimension_numbers = #tpu.dot_dimension_numbers<[1], [0], [0], [1], [0, 0, 1, 1], [], []>} : vector<144x32xbf16>, vector<32x32xbf16>, vector<144x32xf32> -> vector<144x32xf32>
    %46 = vector.broadcast %14 : vector<1x32xf32> to vector<144x32xf32>
    %47 = arith.addf %45, %46 : vector<144x32xf32>
    %48 = arith.addf %5, %47 : vector<144x32xf32>
    %c1 = arith.constant 1 : index
    %c0_27 = arith.constant 0 : index
    %c0_28 = arith.constant 0 : index
    %49 = vector.load %arg4[%c1, %c0_27, %c0_28] : memref<2x32x32xbf16, #tpu.memory_space<vmem>>, vector<1x32x32xbf16>
    %50 = vector.shape_cast %49 : vector<1x32x32xbf16> to vector<32x32xbf16>
    %c1_29 = arith.constant 1 : index
    %c0_30 = arith.constant 0 : index
    %c0_31 = arith.constant 0 : index
    %51 = vector.load %arg5[%c1_29, %c0_30, %c0_31] : memref<2x1x32xf32, #tpu.memory_space<vmem>>, vector<1x1x32xf32>
    %52 = vector.shape_cast %51 : vector<1x1x32xf32> to vector<1x32xf32>
    %c1_32 = arith.constant 1 : index
    %53 = memref.load %arg6[%c1_32] : memref<2xf32, #tpu.memory_space<smem>>
    %c1_33 = arith.constant 1 : index
    %c0_34 = arith.constant 0 : index
    %c0_35 = arith.constant 0 : index
    %54 = vector.load %arg7[%c1_33, %c0_34, %c0_35] : memref<2x32x32xbf16, #tpu.memory_space<vmem>>, vector<1x32x32xbf16>
    %55 = vector.shape_cast %54 : vector<1x32x32xbf16> to vector<32x32xbf16>
    %c1_36 = arith.constant 1 : index
    %c0_37 = arith.constant 0 : index
    %c0_38 = arith.constant 0 : index
    %56 = vector.load %arg8[%c1_36, %c0_37, %c0_38] : memref<2x1x32xf32, #tpu.memory_space<vmem>>, vector<1x1x32xf32>
    %57 = vector.shape_cast %56 : vector<1x1x32xf32> to vector<1x32xf32>
    %cst_39 = arith.constant dense<0.000000e+00> : vector<144xf32>
    %58 = vector.multi_reduction <add>, %48, %cst_39 [1] : vector<144x32xf32> to vector<144xf32>
    %59 = vector.shape_cast %58 : vector<144xf32> to vector<144x1xf32>
    %cst_40 = arith.constant 3.200000e+01 : f32
    %60 = vector.broadcast %cst_40 : f32 to vector<144x1xf32>
    %61 = arith.divf %59, %60 : vector<144x1xf32>
    %62 = arith.mulf %48, %48 : vector<144x32xf32>
    %cst_41 = arith.constant dense<0.000000e+00> : vector<144xf32>
    %63 = vector.multi_reduction <add>, %62, %cst_41 [1] : vector<144x32xf32> to vector<144xf32>
    %64 = vector.shape_cast %63 : vector<144xf32> to vector<144x1xf32>
    %cst_42 = arith.constant 3.200000e+01 : f32
    %65 = vector.broadcast %cst_42 : f32 to vector<144x1xf32>
    %66 = arith.divf %64, %65 : vector<144x1xf32>
    %67 = arith.mulf %61, %61 : vector<144x1xf32>
    %68 = arith.subf %66, %67 : vector<144x1xf32>
    %cst_43 = arith.constant 0.000000e+00 : f32
    %69 = vector.broadcast %cst_43 : f32 to vector<144x1xf32>
    %70 = arith.maximumf %68, %69 : vector<144x1xf32>
    %71 = vector.broadcast %61 : vector<144x1xf32> to vector<144x32xf32>
    %72 = arith.subf %48, %71 : vector<144x32xf32>
    %cst_44 = arith.constant 9.99999974E-6 : f32
    %73 = vector.broadcast %cst_44 : f32 to vector<144x1xf32>
    %74 = arith.addf %70, %73 : vector<144x1xf32>
    %75 = math.rsqrt %74 : vector<144x1xf32>
    %76 = vector.broadcast %75 : vector<144x1xf32> to vector<144x32xf32>
    %77 = arith.mulf %72, %76 : vector<144x32xf32>
    %78 = arith.truncf %77 : vector<144x32xf32> to vector<144x32xbf16>
    %cst_45 = arith.constant dense<0.000000e+00> : vector<144x32xf32>
    %79 = tpu.matmul %78, %50, %cst_45 {dimension_numbers = #tpu.dot_dimension_numbers<[1], [0], [0], [1], [0, 0, 1, 1], [], []>} : vector<144x32xbf16>, vector<32x32xbf16>, vector<144x32xf32> -> vector<144x32xf32>
    %80 = vector.broadcast %52 : vector<1x32xf32> to vector<144x32xf32>
    %81 = arith.addf %79, %80 : vector<144x32xf32>
    %cst_46 = arith.constant 0.000000e+00 : f32
    %82 = vector.broadcast %cst_46 : f32 to vector<144x32xf32>
    %83 = arith.cmpf oge, %81, %82 : vector<144x32xf32>
    %84 = vector.broadcast %53 : f32 to vector<144x32xf32>
    %85 = arith.mulf %84, %81 : vector<144x32xf32>
    %86 = arith.select %83, %81, %85 : vector<144x32xi1>, vector<144x32xf32>
    %87 = arith.truncf %86 : vector<144x32xf32> to vector<144x32xbf16>
    %cst_47 = arith.constant dense<0.000000e+00> : vector<144x32xf32>
    %88 = tpu.matmul %87, %55, %cst_47 {dimension_numbers = #tpu.dot_dimension_numbers<[1], [0], [0], [1], [0, 0, 1, 1], [], []>} : vector<144x32xbf16>, vector<32x32xbf16>, vector<144x32xf32> -> vector<144x32xf32>
    %89 = vector.broadcast %57 : vector<1x32xf32> to vector<144x32xf32>
    %90 = arith.addf %88, %89 : vector<144x32xf32>
    %91 = arith.addf %48, %90 : vector<144x32xf32>
    %92 = arith.truncf %91 : vector<144x32xf32> to vector<144x32xbf16>
    %c0_48 = arith.constant 0 : index
    %c0_49 = arith.constant 0 : index
    %93 = vector.load %arg9[%c0_48, %c0_49] : memref<32x128xbf16, #tpu.memory_space<vmem>>, vector<32x128xbf16>
    %cst_50 = arith.constant dense<0.000000e+00> : vector<144x128xf32>
    %94 = tpu.matmul %92, %93, %cst_50 {dimension_numbers = #tpu.dot_dimension_numbers<[1], [0], [0], [1], [0, 0, 1, 1], [], []>} : vector<144x32xbf16>, vector<32x128xbf16>, vector<144x128xf32> -> vector<144x128xf32>
    %c0_51 = arith.constant 0 : index
    %c0_52 = arith.constant 0 : index
    %95 = vector.load %arg10[%c0_51, %c0_52] : memref<1x128xf32, #tpu.memory_space<vmem>>, vector<1x128xf32>
    %96 = vector.broadcast %95 : vector<1x128xf32> to vector<144x128xf32>
    %97 = arith.addf %94, %96 : vector<144x128xf32>
    %cst_53 = arith.constant 2.000000e+01 : f32
    %98 = vector.broadcast %cst_53 : f32 to vector<144x128xf32>
    %99 = arith.cmpf ogt, %97, %98 : vector<144x128xf32>
    %cst_54 = arith.constant 2.000000e+01 : f32
    %100 = vector.broadcast %cst_54 : f32 to vector<144x128xf32>
    %101 = arith.minimumf %97, %100 : vector<144x128xf32>
    %102 = math.exp %101 : vector<144x128xf32>
    %103 = math.log1p %102 : vector<144x128xf32>
    %104 = arith.select %99, %97, %103 : vector<144x128xi1>, vector<144x128xf32>
    %cst_55 = arith.constant 9.99999997E-7 : f32
    %105 = vector.broadcast %cst_55 : f32 to vector<144x128xf32>
    %106 = arith.addf %104, %105 : vector<144x128xf32>
    %107 = arith.truncf %106 : vector<144x128xf32> to vector<144x128xbf16>
    %c0_56 = arith.constant 0 : index
    %c0_57 = arith.constant 0 : index
    %108 = vector.load %arg11[%c0_56, %c0_57] : memref<144x128xbf16, #tpu.memory_space<vmem>>, vector<144x128xbf16>
    tpu.vector_store %arg11[%c0_56, %c0_57], %107 {strides = array<i32>} : memref<144x128xbf16, #tpu.memory_space<vmem>>, vector<144x128xbf16>,
    return
  }
  func.func @transform_0(%arg0: i32) -> (i32, i32) {
    %c0_i32 = arith.constant 0 : i32
    %c0_i32_0 = arith.constant 0 : i32
    return %arg0, %c0_i32 : i32, i32
  }
  func.func @transform_1(%arg0: i32) -> (i32, i32) {
    %c0_i32 = arith.constant 0 : i32
    %c0_i32_0 = arith.constant 0 : i32
    %c0_i32_1 = arith.constant 0 : i32
    return %c0_i32, %c0_i32_0 : i32, i32
  }
  func.func @transform_2(%arg0: i32) -> (i32, i32) {
    %c0_i32 = arith.constant 0 : i32
    %c0_i32_0 = arith.constant 0 : i32
    %c0_i32_1 = arith.constant 0 : i32
    return %c0_i32, %c0_i32_0 : i32, i32
  }
  func.func @transform_3(%arg0: i32) -> (i32, i32, i32) {
    %c0_i32 = arith.constant 0 : i32
    %c0_i32_0 = arith.constant 0 : i32
    %c0_i32_1 = arith.constant 0 : i32
    %c0_i32_2 = arith.constant 0 : i32
    return %c0_i32, %c0_i32_0, %c0_i32_1 : i32, i32, i32
  }
  func.func @transform_4(%arg0: i32) -> (i32, i32, i32) {
    %c0_i32 = arith.constant 0 : i32
    %c0_i32_0 = arith.constant 0 : i32
    %c0_i32_1 = arith.constant 0 : i32
    %c0_i32_2 = arith.constant 0 : i32
    return %c0_i32, %c0_i32_0, %c0_i32_1 : i32, i32, i32
  }
  func.func @transform_5(%arg0: i32) -> i32 {
    %c0_i32 = arith.constant 0 : i32
    %c0_i32_0 = arith.constant 0 : i32
    return %c0_i32 : i32
  }
  func.func @transform_6(%arg0: i32) -> (i32, i32, i32) {
    %c0_i32 = arith.constant 0 : i32
    %c0_i32_0 = arith.constant 0 : i32
    %c0_i32_1 = arith.constant 0 : i32
    %c0_i32_2 = arith.constant 0 : i32
    return %c0_i32, %c0_i32_0, %c0_i32_1 : i32, i32, i32
  }
  func.func @transform_7(%arg0: i32) -> (i32, i32, i32) {
    %c0_i32 = arith.constant 0 : i32
    %c0_i32_0 = arith.constant 0 : i32
    %c0_i32_1 = arith.constant 0 : i32
    %c0_i32_2 = arith.constant 0 : i32
    return %c0_i32, %c0_i32_0, %c0_i32_1 : i32, i32, i32
  }
  func.func @transform_8(%arg0: i32) -> (i32, i32) {
    %c0_i32 = arith.constant 0 : i32
    %c0_i32_0 = arith.constant 0 : i32
    %c0_i32_1 = arith.constant 0 : i32
    return %c0_i32, %c0_i32_0 : i32, i32
  }
  func.func @transform_9(%arg0: i32) -> (i32, i32) {
    %c0_i32 = arith.constant 0 : i32
    %c0_i32_0 = arith.constant 0 : i32
    %c0_i32_1 = arith.constant 0 : i32
    return %c0_i32, %c0_i32_0 : i32, i32
  }
  func.func @transform_10(%arg0: i32) -> (i32, i32) {
    %c0_i32 = arith.constant 0 : i32
    %c0_i32_0 = arith.constant 0 : i32
    return %arg0, %c0_i32 : i32, i32
  }
}

</mosaic_0001>

<bundles_post_ra>
// kernel: tpu_custom_call.1
= control target key start
LH: loop header
LB: loop body
LE: loop exit
PB: predicated region body
PF: predicated region fallthrough
CT: control target
= control target key end

     0   :  { %15 = vsyncpa [#allocation4], 0  ;;  %s4621_s0 = inlined_call_operand.vmem [shape: bf16[288,8], index: 0, kind: input, shape index: {}]   ;;  %s4622_s1 = inlined_call_operand.vmem [shape: bf16[8,32], index: 1, kind: input, shape index: {}]   ;;  %s4623_s2 = inlined_call_operand.vmem [shape: f32[1,32], index: 2, kind: input, shape index: {}]   ;;  %s4624_s3 = inlined_call_operand.vmem [shape: bf16[2,32,32], index: 3, kind: input, shape index: {}]   ;;  %s4625_s4 = inlined_call_operand.vmem [shape: f32[2,1,32], index: 4, kind: input, shape index: {}]   ;;  %s4626_s5 = inlined_call_operand.vmem [shape: f32[2], index: 5, kind: input, shape index: {}]   ;;  %s4627_s6 = inlined_call_operand.vmem [shape: bf16[2,32,32], index: 6, kind: input, shape index: {}]   ;;  %s4628_s7 = inlined_call_operand.vmem [shape: f32[2,1,32], index: 7, kind: input, shape index: {}]   ;;  %s4629_s8 = inlined_call_operand.vmem [shape: bf16[32,128], index: 8, kind: input, shape index: {}]   ;;  %s4630_s9 = inlined_call_operand.vmem [shape: f32[1,128], index: 9, kind: input, shape index: {}]   ;;  %s4631_s10 = inlined_call_operand.hbm [shape: bf16[288,128], index: 10, kind: output, shape index: {}]  }
   0x1   :  { %16 = vsyncpa [#allocation3], 0 }
   0x2   :  { %18 = vsyncpa [#allocation3 + $0x1], 0  ;;  %s3435_s13 = smov 0   ;;  %s3437_s14 = smov 0  }
   0x3   :  { %s3439_s15 = smov 0   ;;  %s3441_s16 = smov 0  }
   0x4 LB: > { %s3456_s17 = sadd.s32 4294967295, %s3372_s16   ;;  %s2582_s18 = sadd.s32 4294967294, %s3372_s16   ;;  %s3372_s16 = sphi %s3441_s16, %s4648_s16   ;;  %s3368_s15 = sphi %s3439_s15, %s4647_s15   ;;  %s3364_s14 = sphi %s3437_s14, %s4646_s14   ;;  %s3360_s13 = sphi %s3435_s13, %s4645_s13  }
   0x5   : > { %s3460_s19 = sadd.s32 1, %s3372_s16   ;;  %s246_s20 = sadd.s32 1, %s3368_s15 }
   0x6   : > { %s243_s21 = ssub.s32 %s3372_s16, %s3460_s19  ;;  %p256_p0 = scmp.ne.s32.totalorder %s3368_s15, %s3364_s14 }
   0x7   : > { %p244_p1 = scmp.eq.s32.totalorder %s243_s21, 0  ;;  %p257_p2 = scmp.eq.s32.totalorder %s3456_s17, 1 }
   0x8   : > { %p262_p3 = scmp.ne.s32.totalorder %s3364_s14, %s3360_s13  ;;  %p263_p4 = scmp.eq.s32.totalorder %s2582_s18, 1 }
   0x9   : > { %s3471_s22 = scalar_select %p244_p1, %s3368_s15, %s246_s20  }
   0xa   : > { %p3473_p5 = por %p257_p2, %p256_p0  ;;  %p3477_p6 = por %p263_p4, %p262_p3 }
   0xb   : > { %p2583_p7 = scmp.ge.s32.totalorder %s3372_s16, 1  ;;  %p270_p8 = scmp.lt.s32.totalorder %s3372_s16, 3 }
   0xc   : > { %p3090_p9 = scmp.eq.s32.totalorder %s3456_s17, 0  ;;  %s295_s28 = sshll.u32 %s4626_s5, 4  ;;  %s296_s28 = int_to_ptr.vmem [resolvable:$true] %s295_s28 }
   0xd   : > { %p3484_p10 = pnand %p2583_p7, %p270_p8  ;;  %s3293_s29 = scalar_lea.vmem %s296_s28, 16 }
   0xe   : > { %p3294_p13 = scmp.ne.s32.totalorder %s296_s28, %s3293_s29  ;;  %p3301_p3 = scmp.lt.s32.totalorder %s296_s28, %s296_s28 }
   0xf   : > { %p3082_p11 = pneg %p3484_p10  ;;  %p3302_p4 = scmp.lt.s32.totalorder %s3293_s29, %s3293_s29 }
  0x11   : > { %p3083_p12 = pnand %p3090_p9, %p3082_p11  ;;  %p3303_p7 = por %p3302_p4, %p3301_p3 }
  0x13   : > { %p3295_p0 = pneg %p3083_p12 }
  0x15   : > { %p3296_p1 = pnand %p3295_p0, %p3294_p13 }
  0x17   : > { %p3297_p2 = pneg %p3296_p1 }
  0x19   : > { %p3304_p8 = pnand %p3303_p7, %p3297_p2 }
  0x1b   : > { %3307 = shalt.err (!%p3304_p8)
}
  0x1c   : > { %s3374_s30 = smov [#allocation2]   ;;  %329 = sbr.rel (%p3484_p10) target bundleno = 1716 (0x6b4), region = 60 }
  0x1d   : > { %3085 = dma.vmem_to_smem (!%p3083_p12), %s296_s28, 16, %s3374_s30, [#allocation4]  }
  0x21   : > { %3351 = dma.done.wait (%p3090_p9), [#allocation4], 16  }
  0x22   : > { %3353 = vsyncadd (%p3090_p9), [#allocation4], 4294967280 }
  0x23   : > { %335 = sfence }
  0x24   : > { %v394_v0 = vld [vmem:[%s4622_s1] sm:$0xf]  ;;  %vm475_vm0 = vcmask 1043456   ;;  %s368_s18 = smul.u32 18, %s3456_s17  ;;  %v3375_v1 = vmov 0.0   ;;  %vm3376_vm1 = vmmov 0  }
  0x25   : > { %2837 = vmatprep.subr.bf16.mxu0 %v3375_v1  ;;  %v477_v2 = vsel %vm475_vm0, %v394_v0, 0  ;;  %2839 = vmatprep.mubr.msk.bf16.mxu0 %vm3376_vm1, %v3375_v1  ;;  %vm447_vm2 = vcmask 64512   ;;  %v3545_v12 = vld [vmem:[%s4623_s2] ss:$0 sm:$0xff]  ;;  %vm595_vm3 = vcmask 261120   ;;  %s2637_s12 = sld [smem:[#allocation2 + $0x1]] }
  0x26   : > { %2838 = vmatpush3.bf16.msra.mxu0 %v477_v2  ;;  %p369_p10 = scmp.lt.s32.totalorder %s368_s18, 35  ;;  %2875 = vmatprep.subr.bf16.mxu1 %v3375_v1  ;;  %s365_s28 = sand.u32 1, %s3364_s14  }
  0x27   : > { %2879 = vmatprep.mubr.msk.bf16.mxu1 %vm3376_vm1, %v3375_v1  ;;  %2915 = vmatprep.subr.bf16.mxu0 %v3375_v1  ;;  %s4395_s29 = smul.u32 72, %s365_s28 }
  0x28   : > { %s4650_s18 = smov (!%p369_p10, %s368_s18), 35  ;;  %s2718_s11 = smul.u32 1152, %s3456_s17 }
  0x29   : > { %s2588_s20 = sshll.u32 %s4650_s18, 2  ;;  %s4415_s30 = scalar_lea.vmem [#allocation5], %s4395_s29 }
  0x2a   : > { %s372_s26 = scalar_lea.vmem %s4621_s0, %s2588_s20  ;;  %s4574_s21 = scalar_lea.hbm %s4631_s10, %s2718_s11 }
  0x2b   : > { %v3130_v3 = vld [vmem:[%s372_s26] sm:$0xff]   ;;  %v3131_v4 = vld [vmem:[%s372_s26 + $0x8] sm:$0xff]   ;;  %v3132_v5 = vld [vmem:[%s372_s26 + $0x10] sm:$0xff]   ;;  %s4581_s17 = scalar_lea.sflag [#allocation3], %s365_s28 }
  0x2c   : > { %2840 = vmatmul.mubr.msk.bf16.vlgmr.msra.gmra.mxu0 %vm447_vm2, %v3130_v3  ;;  %v3133_v6 = vld [vmem:[%s372_s26 + $0x18] sm:$0xff]   ;;  %v3134_v7 = vld [vmem:[%s372_s26 + $0x20] sm:$0xff]   ;;  %v3135_v8 = vld [vmem:[%s372_s26 + $0x28] sm:$0xff]  }
  0x2d   : > { %2843 = vmatprep.mubr.msk.bf16.mxu0 %vm3376_vm1, %v3375_v1  ;;  %v3136_v9 = vld [vmem:[%s372_s26 + $0x30] sm:$0xff]   ;;  %v3137_v10 = vld [vmem:[%s372_s26 + $0x38] sm:$0xff]   ;;  %v3138_v11 = vld [vmem:[%s372_s26 + $0x40] sm:$0xff]   ;;  %s589_s26 = sld [smem:[#allocation2]] }
  0x34   : > { %2844 = vmatmul.mubr.msk.bf16.gmra.mxu0 %vm447_vm2, %v3131_v4 }
  0x35   : > { %2847 = vmatprep.mubr.msk.bf16.mxu0 %vm3376_vm1, %v3375_v1 }
  0x3c   : > { %2848 = vmatmul.mubr.msk.bf16.gmra.mxu0 %vm447_vm2, %v3132_v5  ;;  %v3139_v5 = vld [vmem:[%s4624_s3 + $0x8] sm:$0xff]  }
  0x3d   : > { %2851 = vmatprep.mubr.msk.bf16.mxu0 %vm3376_vm1, %v3375_v1  ;;  %2876 = vmatpush3.bf16.msra.mxu1 %v3139_v5 }
  0x3e   : > { %2877 = vmatprep.subr.bf16.mxu1 %v3375_v1 }
  0x44   : > { %2852 = vmatmul.mubr.msk.bf16.gmra.mxu0 %vm447_vm2, %v3133_v6 }
  0x45   : > { %2855 = vmatprep.mubr.msk.bf16.mxu0 %vm3376_vm1, %v3375_v1 }
  0x4c   : > { %2856 = vmatmul.mubr.msk.bf16.gmra.mxu0 %vm447_vm2, %v3134_v7 }
  0x4d   : > { %2859 = vmatprep.mubr.msk.bf16.mxu0 %vm3376_vm1, %v3375_v1 }
  0x54   : > { %2860 = vmatmul.mubr.msk.bf16.gmra.mxu0 %vm447_vm2, %v3135_v8 }
  0x55   : > { %2863 = vmatprep.mubr.msk.bf16.mxu0 %vm3376_vm1, %v3375_v1 }
  0x5c   : > { %2864 = vmatmul.mubr.msk.bf16.gmra.mxu0 %vm447_vm2, %v3136_v9 }
  0x5d   : > { %2867 = vmatprep.mubr.msk.bf16.mxu0 %vm3376_vm1, %v3375_v1 }
  0x64   : > { %2868 = vmatmul.mubr.msk.bf16.gmra.mxu0 %vm447_vm2, %v3137_v10 }
  0x65   : > { %2871 = vmatprep.mubr.msk.bf16.mxu0 %vm3376_vm1, %v3375_v1 }
  0x6c   : > { %2872 = vmatmul.mubr.msk.bf16.gmra.mxu0 %vm447_vm2, %v3138_v11 }
  0x6d   : > { %2919 = vmatprep.mubr.msk.bf16.mxu0 %vm3376_vm1, %v3375_v1 }
  0xec   : > { %v513_v13 = vpop.f32.mrf.mxu0 }
  0xed   : > { %v3548_v14 = vadd.f32 %v3545_v12, %v513_v13  ;;  %v3140_v13 = vld [vmem:[%s4624_s3] sm:$0xff]  }
  0xee   : > { %v2841_v15 = vpop.f32.mrf.mxu0  ;;  %2878 = vmatpush3.bf16.msra.mxu1 %v3140_v13 }
  0xef   : > { %v596_v16 = vsel %vm595_vm3, %v3548_v14, 0.0  ;;  %v669_v17 = vmul.f32 %v3548_v14, %v3548_v14  ;;  %2955 = vmatprep.subr.bf16.mxu1 %v3375_v1 }
  0xf0   : > { %597 = vadd.xlane.f32.xlu0 %v596_v16  ;;  %v516_v18 = vpop.f32.mrf.mxu0 }
  0xf1   : > { %v3555_v19 = vadd.f32 %v3545_v12, %v516_v18  ;;  %v687_v20 = vsel %vm595_vm3, %v669_v17, 0.0 }
  0xf2   : > { %688 = vadd.xlane.f32.xlu1 %v687_v20  ;;  %v2842_v21 = vpop.f32.mrf.mxu0 }
  0xf3   : > { %v599_v22 = vsel %vm595_vm3, %v3555_v19, 0.0  ;;  %v670_v23 = vmul.f32 %v3555_v19, %v3555_v19 }
  0xf4   : > { %600 = vadd.xlane.f32.xlu0 %v599_v22  ;;  %v521_v24 = vpop.f32.mrf.mxu0 }
  0xf5   : > { %v3563_v25 = vadd.f32 %v3545_v12, %v521_v24  ;;  %v690_v26 = vsel %vm595_vm3, %v670_v23, 0.0 }
  0xf6   : > { %691 = vadd.xlane.f32.xlu1 %v690_v26  ;;  %v2845_v27 = vpop.f32.mrf.mxu0 }
  0xf7   : > { %v602_v28 = vsel %vm595_vm3, %v3563_v25, 0.0  ;;  %v671_v29 = vmul.f32 %v3563_v25, %v3563_v25 }
  0xf8   : > { %603 = vadd.xlane.f32.xlu0 %v602_v28  ;;  %v524_v30 = vpop.f32.mrf.mxu0 }
  0xf9   : > { %v3571_v31 = vadd.f32 %v3545_v12, %v524_v30  ;;  %v693_v33 = vsel %vm595_vm3, %v671_v29, 0.0 }
  0xfa   : > { %v2846_v32 = vpop.f32.mrf.mxu0 }
  0xfb   : > { %v605_v34 = vsel %vm595_vm3, %v3571_v31, 0.0  ;;  %v672_v35 = vmul.f32 %v3571_v31, %v3571_v31 }
  0xfc   : > { %694 = vadd.xlane.f32.xlu0 %v693_v33  ;;  %606 = vadd.xlane.f32.xlu1 %v605_v34  ;;  %v529_v36 = vpop.f32.mrf.mxu0 }
  0xfd   : > { %v3579_v37 = vadd.f32 %v3545_v12, %v529_v36  ;;  %v696_v39 = vsel %vm595_vm3, %v672_v35, 0.0 }
  0xfe   : > { %v2849_v38 = vpop.f32.mrf.mxu0 }
  0xff   : > { %v608_v40 = vsel %vm595_vm3, %v3579_v37, 0.0  ;;  %v673_v41 = vmul.f32 %v3579_v37, %v3579_v37 }
 0x100   : > { %697 = vadd.xlane.f32.xlu1 %v696_v39  ;;  %609 = vadd.xlane.f32.xlu0 %v608_v40  ;;  %v532_v42 = vpop.f32.mrf.mxu0 }
 0x101   : > { %v3587_v43 = vadd.f32 %v3545_v12, %v532_v42  ;;  %v699_v45 = vsel %vm595_vm3, %v673_v41, 0.0 }
 0x102   : > { %v2850_v44 = vpop.f32.mrf.mxu0 }
 0x103   : > { %v611_v46 = vsel %vm595_vm3, %v3587_v43, 0.0  ;;  %v674_v47 = vmul.f32 %v3587_v43, %v3587_v43 }
 0x104   : > { %700 = vadd.xlane.f32.xlu0 %v699_v45  ;;  %612 = vadd.xlane.f32.xlu1 %v611_v46  ;;  %v537_v48 = vpop.f32.mrf.mxu0 }
 0x105   : > { %v3595_v49 = vadd.f32 %v3545_v12, %v537_v48  ;;  %v702_v51 = vsel %vm595_vm3, %v674_v47, 0.0 }
 0x106   : > { %v2853_v50 = vpop.f32.mrf.mxu0 }
 0x107   : > { %v614_v52 = vsel %vm595_vm3, %v3595_v49, 0.0  ;;  %v675_v53 = vmul.f32 %v3595_v49, %v3595_v49 }
 0x108   : > { %703 = vadd.xlane.f32.xlu1 %v702_v51  ;;  %615 = vadd.xlane.f32.xlu0 %v614_v52  ;;  %v540_v54 = vpop.f32.mrf.mxu0 }
 0x109   : > { %v3603_v55 = vadd.f32 %v3545_v12, %v540_v54  ;;  %v705_v57 = vsel %vm595_vm3, %v675_v53, 0.0 }
 0x10a   : > { %v2854_v56 = vpop.f32.mrf.mxu0 }
 0x10b   : > { %v617_v58 = vsel %vm595_vm3, %v3603_v55, 0.0  ;;  %v676_v59 = vmul.f32 %v3603_v55, %v3603_v55 }
 0x10c   : > { %706 = vadd.xlane.f32.xlu0 %v705_v57  ;;  %618 = vadd.xlane.f32.xlu1 %v617_v58  ;;  %v545_v60 = vpop.f32.mrf.mxu0 }
 0x10d   : > { %v3611_v61 = vadd.f32 %v3545_v12, %v545_v60  ;;  %v708_v63 = vsel %vm595_vm3, %v676_v59, 0.0 }
 0x10e   : > { %v2857_v62 = vpop.f32.mrf.mxu0 }
 0x10f   : > { %v620_v0 = vsel %vm595_vm3, %v3611_v61, 0.0  ;;  %v677_v2 = vmul.f32 %v3611_v61, %v3611_v61 }
 0x110   : > { %709 = vadd.xlane.f32.xlu1 %v708_v63  ;;  %621 = vadd.xlane.f32.xlu0 %v620_v0  ;;  %v548_v3 = vpop.f32.mrf.mxu0 }
 0x111   : > { %v3619_v4 = vadd.f32 %v3545_v12, %v548_v3  ;;  %v711_v7 = vsel %vm595_vm3, %v677_v2, 0.0 }
 0x112   : > { %v2858_v6 = vpop.f32.mrf.mxu0 }
 0x113   : > { %v623_v8 = vsel %vm595_vm3, %v3619_v4, 0.0  ;;  %v678_v9 = vmul.f32 %v3619_v4, %v3619_v4 }
 0x114   : > { %712 = vadd.xlane.f32.xlu0 %v711_v7  ;;  %624 = vadd.xlane.f32.xlu1 %v623_v8  ;;  %v553_v10 = vpop.f32.mrf.mxu0  ;;  %v3141_v8 = vld [vmem:[%s4627_s6 + $0x8] sm:$0xff]  }
 0x115   : > { %v3630_v11 = vadd.f32 %v3545_v12, %v553_v10  ;;  %v714_v16 = vsel %vm595_vm3, %v678_v9, 0.0  ;;  %2916 = vmatpush3.bf16.msra.mxu0 %v3141_v8 }
 0x116   : > { %v2861_v15 = vpop.f32.mrf.mxu0  ;;  %2917 = vmatprep.subr.bf16.mxu0 %v3375_v1 }
 0x117   : > { %v626_v17 = vsel %vm595_vm3, %v3630_v11, 0.0  ;;  %v679_v18 = vmul.f32 %v3630_v11, %v3630_v11 }
 0x118   : > { %715 = vadd.xlane.f32.xlu1 %v714_v16  ;;  %627 = vadd.xlane.f32.xlu0 %v626_v17  ;;  %v556_v20 = vpop.f32.mrf.mxu0 }
 0x119   : > { %v3642_v21 = vadd.f32 %v3545_v12, %v556_v20  ;;  %v717_v23 = vsel %vm595_vm3, %v679_v18, 0.0 }
 0x11a   : > { %v2862_v22 = vpop.f32.mrf.mxu0 }
 0x11b   : > { %v629_v24 = vsel %vm595_vm3, %v3642_v21, 0.0  ;;  %v680_v26 = vmul.f32 %v3642_v21, %v3642_v21 }
 0x11c   : > { %718 = vadd.xlane.f32.xlu0 %v717_v23  ;;  %630 = vadd.xlane.f32.xlu1 %v629_v24  ;;  %v561_v27 = vpop.f32.mrf.mxu0 }
 0x11d   : > { %v3651_v28 = vadd.f32 %v3545_v12, %v561_v27  ;;  %v720_v30 = vsel %vm595_vm3, %v680_v26, 0.0 }
 0x11e   : > { %v2865_v29 = vpop.f32.mrf.mxu0 }
 0x11f   : > { %v632_v32 = vsel %vm595_vm3, %v3651_v28, 0.0  ;;  %v681_v33 = vmul.f32 %v3651_v28, %v3651_v28 }
 0x120   : > { %721 = vadd.xlane.f32.xlu1 %v720_v30  ;;  %633 = vadd.xlane.f32.xlu0 %v632_v32  ;;  %v564_v34 = vpop.f32.mrf.mxu0 }
 0x121   : > { %v3659_v35 = vadd.f32 %v3545_v12, %v564_v34  ;;  %v723_v38 = vsel %vm595_vm3, %v681_v33, 0.0 }
 0x122   : > { %v2866_v36 = vpop.f32.mrf.mxu0 }
 0x123   : > { %v635_v39 = vsel %vm595_vm3, %v3659_v35, 0.0  ;;  %v682_v40 = vmul.f32 %v3659_v35, %v3659_v35 }
 0x124   : > { %724 = vadd.xlane.f32.xlu0 %v723_v38  ;;  %636 = vadd.xlane.f32.xlu1 %v635_v39  ;;  %v569_v41 = vpop.f32.mrf.mxu0 }
 0x125   : > { %v3667_v42 = vadd.f32 %v3545_v12, %v569_v41  ;;  %v726_v45 = vsel %vm595_vm3, %v682_v40, 0.0 }
 0x126   : > { %v2869_v44 = vpop.f32.mrf.mxu0 }
 0x127   : > { %v638_v46 = vsel %vm595_vm3, %v3667_v42, 0.0  ;;  %v683_v47 = vmul.f32 %v3667_v42, %v3667_v42 }
 0x128   : > { %727 = vadd.xlane.f32.xlu1 %v726_v45  ;;  %639 = vadd.xlane.f32.xlu0 %v638_v46  ;;  %v572_v48 = vpop.f32.mrf.mxu0 }
 0x129   : > { %v3675_v50 = vadd.f32 %v3545_v12, %v572_v48  ;;  %v729_v52 = vsel %vm595_vm3, %v683_v47, 0.0 }
 0x12a   : > { %v2870_v51 = vpop.f32.mrf.mxu0 }
 0x12b   : > { %v641_v53 = vsel %vm595_vm3, %v3675_v50, 0.0  ;;  %v684_v54 = vmul.f32 %v3675_v50, %v3675_v50 }
 0x12c   : > { %730 = vadd.xlane.f32.xlu0 %v729_v52  ;;  %642 = vadd.xlane.f32.xlu1 %v641_v53  ;;  %v577_v56 = vpop.f32.mrf.mxu0 }
 0x12d   : > { %v3683_v57 = vadd.f32 %v3545_v12, %v577_v56  ;;  %v732_v59 = vsel %vm595_vm3, %v684_v54, 0.0 }
 0x12e   : > { %v2873_v58 = vpop.f32.mrf.mxu0 }
 0x12f   : > { %v644_v60 = vsel %vm595_vm3, %v3683_v57, 0.0  ;;  %v685_v62 = vmul.f32 %v3683_v57, %v3683_v57 }
 0x130   : > { %733 = vadd.xlane.f32.xlu1 %v732_v59  ;;  %645 = vadd.xlane.f32.xlu0 %v644_v60  ;;  %v580_v63 = vpop.f32.mrf.mxu0 }
 0x131   : > { %v3691_v0 = vadd.f32 %v3545_v12, %v580_v63  ;;  %v735_v3 = vsel %vm595_vm3, %v685_v62, 0.0  ;;  %v3142_v12 = vld [vmem:[%s4627_s6] sm:$0xff]  }
 0x132   : > { %v2874_v2 = vpop.f32.mrf.mxu0  ;;  %2918 = vmatpush3.bf16.msra.mxu0 %v3142_v12 }
 0x133   : > { %v647_v5 = vsel %vm595_vm3, %v3691_v0, 0.0  ;;  %v686_v6 = vmul.f32 %v3691_v0, %v3691_v0  ;;  %2995 = vmatprep.subr.bf16.mxu0 %v3375_v1 }
 0x134   : > { %736 = vadd.xlane.f32.xlu0 %v735_v3  ;;  %648 = vadd.xlane.f32.xlu1 %v647_v5 }
 0x135   : > { %v738_v7 = vsel %vm595_vm3, %v686_v6, 0.0 }
 0x138   : > { %739 = vadd.xlane.f32.xlu1 %v738_v7 }
 0x179   : > { %v598_v9 = vpop.xlane.xlu0 %597 }
 0x17a   : > { %v651_v10 = vmul.f32 0.03125, %v598_v9 }
 0x17b   : > { %v689_v13 = vpop.xlane.xlu1 %688 }
 0x17c   : > { %v759_v15 = vmul.f32 %v651_v10, %v651_v10  ;;  %v741_v16 = vmul.f32 0.03125, %v689_v13 }
 0x17d   : > { %v601_v17 = vpop.xlane.xlu0 %600 }
 0x17e   : > { %v777_v18 = vsub.f32 %v741_v16, %v759_v15  ;;  %v652_v20 = vmul.f32 0.03125, %v601_v17  ;;  %v813_v17 = vsub.f32 %v3548_v14, %v651_v10 }
 0x17f   : > { %v692_v22 = vpop.xlane.xlu1 %691 }
 0x180   : > { %v795_v23 = vmax.f32 %v777_v18, 0.0  ;;  %v760_v24 = vmul.f32 %v652_v20, %v652_v20  ;;  %v742_v26 = vmul.f32 0.03125, %v692_v22  ;;  %v814_v18 = vsub.f32 %v3555_v19, %v652_v20 }
 0x181   : > { %v604_v27 = vpop.xlane.xlu0 %603 }
 0x182   : > { %v778_v29 = vsub.f32 %v742_v26, %v760_v24  ;;  %v3707_v30 = vmul.f32 0.03125, %v604_v27  ;;  %v831_v32 = vadd.f32 1e-05, %v795_v23 }
 0x184   : > { %v796_v33 = vmax.f32 %v778_v29, 0.0  ;;  %v761_v39 = vmul.f32 %v3707_v30, %v3707_v30  ;;  %3149 = vrsqrt.f32 %v831_v32 }
 0x185   : > { %v695_v34 = vpop.xlane.xlu0 %694  ;;  %v607_v36 = vpop.xlane.xlu1 %606 }
 0x186   : > { %v832_v38 = vadd.f32 1e-05, %v796_v33  ;;  %v743_v40 = vmul.f32 0.03125, %v695_v34  ;;  %v3711_v41 = vmul.f32 0.03125, %v607_v36 }
 0x188   : > { %3151 = vrsqrt.f32 %v832_v38  ;;  %v779_v44 = vsub.f32 %v743_v40, %v761_v39  ;;  %v762_v48 = vmul.f32 %v3711_v41, %v3711_v41 }
 0x189   : > { %v698_v45 = vpop.xlane.xlu1 %697  ;;  %v610_v46 = vpop.xlane.xlu0 %609 }
 0x18a   : > { %v797_v47 = vmax.f32 %v779_v44, 0.0  ;;  %v744_v51 = vmul.f32 0.03125, %v698_v45  ;;  %v3715_v52 = vmul.f32 0.03125, %v610_v46 }
 0x18c   : > { %v780_v53 = vsub.f32 %v744_v51, %v762_v48  ;;  %v833_v54 = vadd.f32 1e-05, %v797_v47  ;;  %v763_v60 = vmul.f32 %v3715_v52, %v3715_v52 }
 0x18d   : > { %v701_v56 = vpop.xlane.xlu0 %700  ;;  %v613_v58 = vpop.xlane.xlu1 %612 }
 0x18e   : > { %v798_v59 = vmax.f32 %v780_v53, 0.0  ;;  %v745_v62 = vmul.f32 0.03125, %v701_v56  ;;  %v3719_v63 = vmul.f32 0.03125, %v613_v58  ;;  %3153 = vrsqrt.f32 %v833_v54 }
 0x190   : > { %v834_v2 = vadd.f32 1e-05, %v798_v59  ;;  %v781_v3 = vsub.f32 %v745_v62, %v763_v60  ;;  %v764_v5 = vmul.f32 %v3719_v63, %v3719_v63 }
 0x191   : > { %v704_v6 = vpop.xlane.xlu1 %703  ;;  %v616_v7 = vpop.xlane.xlu0 %615 }
 0x192   : > { %3155 = vrsqrt.f32 %v834_v2  ;;  %v799_v8 = vmax.f32 %v781_v3, 0.0  ;;  %v746_v12 = vmul.f32 0.03125, %v704_v6  ;;  %v3723_v9 = vmul.f32 0.03125, %v616_v7  ;;  %v3150_v13 = vpop.eup %3149 }
 0x193   : > { %v867_v33 = vmul.f32 %v3150_v13, %v813_v17  ;;  %v815_v2 = vsub.f32 %v3563_v25, %v3707_v30  ;;  %v816_v3 = vsub.f32 %v3571_v31, %v3711_v41 }
 0x194   : > { %v782_v15 = vsub.f32 %v746_v12, %v764_v5  ;;  %v835_v22 = vadd.f32 1e-05, %v799_v8  ;;  %v765_v27 = vmul.f32 %v3723_v9, %v3723_v9 }
 0x195   : > { %v3152_v16 = vpop.eup %3151  ;;  %v707_v23 = vpop.xlane.xlu0 %706 }
 0x196   : > { %v619_v24 = vpop.xlane.xlu1 %618  ;;  %v800_v26 = vmax.f32 %v782_v15, 0.0  ;;  %v747_v29 = vmul.f32 0.03125, %v707_v23  ;;  %v868_v34 = vmul.f32 %v3152_v16, %v814_v18  ;;  %3157 = vrsqrt.f32 %v835_v22 }
 0x197   : > { %v3729_v32 = vmul.f32 0.03125, %v619_v24 }
 0x198   : > { %v836_v36 = vadd.f32 1e-05, %v800_v26  ;;  %v783_v38 = vsub.f32 %v747_v29, %v765_v27  ;;  %v885_v40 = vpack.c.bf16 %v868_v34, %v867_v33 }
 0x199   : > { %v766_v10 = vmul.f32 %v3729_v32, %v3729_v32  ;;  %v622_v20 = vpop.xlane.xlu0 %621 }
 0x19a   : > { %v710_v39 = vpop.xlane.xlu1 %709  ;;  %3159 = vrsqrt.f32 %v836_v36  ;;  %v801_v44 = vmax.f32 %v783_v38, 0.0  ;;  %v3733_v46 = vmul.f32 0.03125, %v622_v20  ;;  %2880 = vmatmul.mubr.msk.bf16.vlgmr.msra.gmra.mxu1 %vm595_vm3, %v885_v40  ;;  %v817_v38 = vsub.f32 %v3579_v37, %v3715_v52 }
 0x19b   : > { %v748_v45 = vmul.f32 0.03125, %v710_v39  ;;  %2883 = vmatprep.mubr.msk.bf16.mxu1 %vm3376_vm1, %v3375_v1  ;;  %v3154_v54 = vpop.eup %3153 }
 0x19c   : > { %v837_v48 = vadd.f32 1e-05, %v801_v44  ;;  %v767_v58 = vmul.f32 %v3733_v46, %v3733_v46  ;;  %v869_v13 = vmul.f32 %v3154_v54, %v815_v2 }
 0x19d   : > { %v784_v47 = vsub.f32 %v748_v45, %v766_v10  ;;  %v713_v51 = vpop.xlane.xlu0 %712  ;;  %v818_v10 = vsub.f32 %v3587_v43, %v3719_v63 }
 0x19e   : > { %v625_v53 = vpop.xlane.xlu1 %624  ;;  %v749_v59 = vmul.f32 0.03125, %v713_v51  ;;  %3161 = vrsqrt.f32 %v837_v48 }
 0x19f   : > { %v802_v56 = vmax.f32 %v784_v47, 0.0  ;;  %v3740_v60 = vmul.f32 0.03125, %v625_v53  ;;  %v3156_v62 = vpop.eup %3155 }
 0x1a0   : > { %v785_v6 = vsub.f32 %v749_v59, %v767_v58  ;;  %v870_v15 = vmul.f32 %v3156_v62, %v816_v3 }
 0x1a1   : > { %v838_v5 = vadd.f32 1e-05, %v802_v56  ;;  %v768_v7 = vmul.f32 %v3740_v60, %v3740_v60  ;;  %v628_v12 = vpop.xlane.xlu0 %627 }
 0x1a2   : > { %v716_v8 = vpop.xlane.xlu1 %715  ;;  %v803_v16 = vmax.f32 %v785_v6, 0.0  ;;  %v3748_v18 = vmul.f32 0.03125, %v628_v12  ;;  %v886_v22 = vpack.c.bf16 %v870_v15, %v869_v13  ;;  %v820_v12 = vsub.f32 %v3603_v55, %v3729_v32 }
 0x1a3   : > { %3163 = vrsqrt.f32 %v838_v5  ;;  %v750_v17 = vmul.f32 0.03125, %v716_v8  ;;  %v3158_v26 = vpop.eup %3157  ;;  %v819_v8 = vsub.f32 %v3595_v49, %v3723_v9 }
 0x1a4   : > { %v839_v23 = vadd.f32 1e-05, %v803_v16  ;;  %2884 = vmatmul.mubr.msk.bf16.gmra.mxu1 %vm595_vm3, %v886_v22  ;;  %v769_v29 = vmul.f32 %v3748_v18, %v3748_v18  ;;  %v871_v47 = vmul.f32 %v3158_v26, %v817_v38 }
 0x1a5   : > { %v786_v30 = vsub.f32 %v750_v17, %v768_v7  ;;  %v719_v41 = vpop.xlane.xlu0 %718  ;;  %2887 = vmatprep.mubr.msk.bf16.mxu1 %vm3376_vm1, %v3375_v1 }
 0x1a6   : > { %v631_v24 = vpop.xlane.xlu1 %630  ;;  %v751_v33 = vmul.f32 0.03125, %v719_v41  ;;  %3165 = vrsqrt.f32 %v839_v23 }
 0x1a7   : > { %v804_v27 = vmax.f32 %v786_v30, 0.0  ;;  %v3753_v34 = vmul.f32 0.03125, %v631_v24  ;;  %v3160_v36 = vpop.eup %3159 }
 0x1a8   : > { %v787_v20 = vsub.f32 %v751_v33, %v769_v29  ;;  %v872_v48 = vmul.f32 %v3160_v36, %v818_v10 }
 0x1a9   : > { %v840_v39 = vadd.f32 1e-05, %v804_v27  ;;  %v770_v40 = vmul.f32 %v3753_v34, %v3753_v34  ;;  %v634_v45 = vpop.xlane.xlu0 %633 }
 0x1aa   : > { %v722_v44 = vpop.xlane.xlu1 %721  ;;  %v805_v51 = vmax.f32 %v787_v20, 0.0  ;;  %v3763_v54 = vmul.f32 0.03125, %v634_v45  ;;  %v887_v56 = vpack.c.bf16 %v872_v48, %v871_v47  ;;  %v822_v45 = vsub.f32 %v3619_v4, %v3740_v60 }
 0x1ab   : > { %3167 = vrsqrt.f32 %v840_v39  ;;  %v752_v53 = vmul.f32 0.03125, %v722_v44  ;;  %v3162_v62 = vpop.eup %3161  ;;  %v821_v44 = vsub.f32 %v3611_v61, %v3733_v46 }
 0x1ac   : > { %v841_v58 = vadd.f32 1e-05, %v805_v51  ;;  %2888 = vmatmul.mubr.msk.bf16.gmra.mxu1 %vm595_vm3, %v887_v56  ;;  %v771_v3 = vmul.f32 %v3763_v54, %v3763_v54  ;;  %v873_v30 = vmul.f32 %v3162_v62, %v819_v8 }
 0x1ad   : > { %v788_v52 = vsub.f32 %v752_v53, %v770_v40  ;;  %v725_v63 = vpop.xlane.xlu0 %724  ;;  %2891 = vmatprep.mubr.msk.bf16.mxu1 %vm3376_vm1, %v3375_v1 }
 0x1ae   : > { %v637_v59 = vpop.xlane.xlu1 %636  ;;  %v753_v5 = vmul.f32 0.03125, %v725_v63  ;;  %3169 = vrsqrt.f32 %v841_v58 }
 0x1af   : > { %v806_v2 = vmax.f32 %v788_v52, 0.0  ;;  %v3768_v6 = vmul.f32 0.03125, %v637_v59 }
 0x1b0   : > { %v3164_v7 = vpop.eup %3163  ;;  %v789_v15 = vsub.f32 %v753_v5, %v771_v3 }
 0x1b1   : > { %v842_v13 = vadd.f32 1e-05, %v806_v2  ;;  %v772_v16 = vmul.f32 %v3768_v6, %v3768_v6  ;;  %v640_v22 = vpop.xlane.xlu0 %639  ;;  %v874_v23 = vmul.f32 %v3164_v7, %v820_v12 }
 0x1b2   : > { %v728_v17 = vpop.xlane.xlu1 %727  ;;  %v807_v41 = vmax.f32 %v789_v15, 0.0  ;;  %v3778_v26 = vmul.f32 0.03125, %v640_v22  ;;  %v824_v22 = vsub.f32 %v3642_v21, %v3753_v34  ;;  %v826_v34 = vsub.f32 %v3659_v35, %v3768_v6 }
 0x1b3   : > { %3171 = vrsqrt.f32 %v842_v13  ;;  %v754_v24 = vmul.f32 0.03125, %v728_v17  ;;  %v888_v27 = vpack.c.bf16 %v874_v23, %v873_v30  ;;  %v3166_v36 = vpop.eup %3165  ;;  %v823_v17 = vsub.f32 %v3630_v11, %v3748_v18 }
 0x1b4   : > { %v843_v9 = vadd.f32 1e-05, %v807_v41  ;;  %v773_v10 = vmul.f32 %v3778_v26, %v3778_v26  ;;  %v875_v52 = vmul.f32 %v3166_v36, %v821_v44  ;;  %v825_v18 = vsub.f32 %v3651_v28, %v3763_v54 }
 0x1b5   : > { %v790_v29 = vsub.f32 %v754_v24, %v772_v16  ;;  %2892 = vmatmul.mubr.msk.bf16.gmra.mxu1 %vm595_vm3, %v888_v27  ;;  %v731_v32 = vpop.xlane.xlu0 %730  ;;  %v827_v54 = vsub.f32 %v3667_v42, %v3778_v26 }
 0x1b6   : > { %v643_v33 = vpop.xlane.xlu1 %642  ;;  %v755_v39 = vmul.f32 0.03125, %v731_v32  ;;  %2895 = vmatprep.mubr.msk.bf16.mxu1 %vm3376_vm1, %v3375_v1  ;;  %3173 = vrsqrt.f32 %v843_v9 }
 0x1b7   : > { %v808_v38 = vmax.f32 %v790_v29, 0.0  ;;  %v3783_v20 = vmul.f32 0.03125, %v643_v33 }
 0x1b8   : > { %v3168_v40 = vpop.eup %3167  ;;  %v791_v48 = vsub.f32 %v755_v39, %v773_v10 }
 0x1b9   : > { %v844_v47 = vadd.f32 1e-05, %v808_v38  ;;  %v774_v51 = vmul.f32 %v3783_v20, %v3783_v20  ;;  %v646_v56 = vpop.xlane.xlu0 %645  ;;  %v876_v58 = vmul.f32 %v3168_v40, %v822_v45  ;;  %v828_v6 = vsub.f32 %v3675_v50, %v3783_v20 }
 0x1ba   : > { %v734_v53 = vpop.xlane.xlu1 %733  ;;  %v809_v63 = vmax.f32 %v791_v48, 0.0  ;;  %v667_v62 = vmul.f32 0.03125, %v646_v56 }
 0x1bb   : > { %3175 = vrsqrt.f32 %v844_v47  ;;  %v756_v59 = vmul.f32 0.03125, %v734_v53  ;;  %v889_v2 = vpack.c.bf16 %v876_v58, %v875_v52  ;;  %v3170_v7 = vpop.eup %3169 }
 0x1bc   : > { %v845_v3 = vadd.f32 1e-05, %v809_v63  ;;  %v775_v12 = vmul.f32 %v667_v62, %v667_v62  ;;  %v877_v24 = vmul.f32 %v3170_v7, %v823_v17  ;;  %v3828_v7 = vstv %s589_s26  ;;  %s3377_s26 = smov [#allocation5]  }
 0x1bd   : > { %v792_v46 = vsub.f32 %v756_v59, %v774_v51  ;;  %2896 = vmatmul.mubr.msk.bf16.gmra.mxu1 %vm595_vm3, %v889_v2  ;;  %v737_v60 = vpop.xlane.xlu0 %736  ;;  %v829_v59 = vsub.f32 %v3683_v57, %v667_v62  ;;  %s3312_s27 = sshll.u32 %s3377_s26, 4  ;;  %s3313_s27 = int_to_ptr.vmem [resolvable:$false] %s3312_s27 }
 0x1be   : > { %v649_v5 = vpop.xlane.xlu1 %648  ;;  %v757_v13 = vmul.f32 0.03125, %v737_v60  ;;  %2899 = vmatprep.mubr.msk.bf16.mxu1 %vm3376_vm1, %v3375_v1  ;;  %3177 = vrsqrt.f32 %v845_v3  ;;  %v3825_v60 = vld [vmem:[%s4625_s4] ss:$0 sm:$0xff]  ;;  %s3314_s29 = scalar_lea.vmem %s3313_s27, 2304 }
 0x1bf   : > { %v810_v8 = vmax.f32 %v792_v46, 0.0  ;;  %v668_v15 = vmul.f32 0.03125, %v649_v5 }
 0x1c0   : > { %v3172_v16 = vpop.eup %3171  ;;  %v793_v23 = vsub.f32 %v757_v13, %v775_v12 }
 0x1c1   : > { %v846_v30 = vadd.f32 1e-05, %v810_v8  ;;  %v878_v27 = vmul.f32 %v3172_v16, %v824_v22  ;;  %v776_v29 = vmul.f32 %v668_v15, %v668_v15  ;;  %v830_v2 = vsub.f32 %v3691_v0, %v668_v15 }
 0x1c2   : > { %v740_v41 = vpop.xlane.xlu1 %739  ;;  %v811_v9 = vmax.f32 %v793_v23, 0.0 }
 0x1c3   : > { %3179 = vrsqrt.f32 %v846_v30  ;;  %v758_v32 = vmul.f32 0.03125, %v740_v41  ;;  %v890_v33 = vpack.c.bf16 %v878_v27, %v877_v24  ;;  %v3174_v10 = vpop.eup %3173 }
 0x1c4   : > { %v847_v36 = vadd.f32 1e-05, %v811_v9  ;;  %v879_v45 = vmul.f32 %v3174_v10, %v825_v18 }
 0x1c5   : > { %v794_v38 = vsub.f32 %v758_v32, %v776_v29  ;;  %2900 = vmatmul.mubr.msk.bf16.gmra.mxu1 %vm595_vm3, %v890_v33 }
 0x1c6   : > { %2903 = vmatprep.mubr.msk.bf16.mxu1 %vm3376_vm1, %v3375_v1  ;;  %3181 = vrsqrt.f32 %v847_v36 }
 0x1c7   : > { %v812_v39 = vmax.f32 %v794_v38, 0.0 }
 0x1c8   : > { %v3176_v40 = vpop.eup %3175 }
 0x1c9   : > { %v848_v44 = vadd.f32 1e-05, %v812_v39  ;;  %v880_v47 = vmul.f32 %v3176_v40, %v826_v34 }
 0x1cb   : > { %3183 = vrsqrt.f32 %v848_v44  ;;  %v891_v48 = vpack.c.bf16 %v880_v47, %v879_v45  ;;  %v3178_v51 = vpop.eup %3177 }
 0x1cc   : > { %v881_v56 = vmul.f32 %v3178_v51, %v827_v54 }
 0x1cd   : > { %2904 = vmatmul.mubr.msk.bf16.gmra.mxu1 %vm595_vm3, %v891_v48 }
 0x1ce   : > { %2907 = vmatprep.mubr.msk.bf16.mxu1 %vm3376_vm1, %v3375_v1 }
 0x1d0   : > { %v3180_v53 = vpop.eup %3179 }
 0x1d1   : > { %v882_v52 = vmul.f32 %v3180_v53, %v828_v6 }
 0x1d3   : > { %v892_v58 = vpack.c.bf16 %v882_v52, %v881_v56  ;;  %v3182_v63 = vpop.eup %3181 }
 0x1d4   : > { %v883_v3 = vmul.f32 %v3182_v63, %v829_v59 }
 0x1d5   : > { %2908 = vmatmul.mubr.msk.bf16.gmra.mxu1 %vm595_vm3, %v892_v58 }
 0x1d6   : > { %2911 = vmatprep.mubr.msk.bf16.mxu1 %vm3376_vm1, %v3375_v1 }
 0x1d8   : > { %v3184_v26 = vpop.eup %3183 }
 0x1d9   : > { %v884_v20 = vmul.f32 %v3184_v26, %v830_v2 }
 0x1db   : > { %v893_v46 = vpack.c.bf16 %v884_v20, %v883_v3 }
 0x1dd   : > { %2912 = vmatmul.mubr.msk.bf16.gmra.mxu1 %vm595_vm3, %v893_v46 }
 0x1de   : > { %2959 = vmatprep.mubr.msk.bf16.mxu1 %vm3376_vm1, %v3375_v1 }
 0x25a   : > { %v973_v62 = vpop.f32.mrf.mxu1 }
 0x25b   : > { %v974_v5 = vadd.f32 %v3825_v60, %v973_v62 }
 0x25c   : > { %v2881_v8 = vpop.f32.mrf.mxu1 }
 0x25d   : > { %v1063_v13 = vmul.f32 %v3828_v7, %v974_v5  ;;  %vm1044_vm4 = vcmp.ge.f32.partialorder %v974_v5, 0.0 }
 0x25e   : > { %v976_v12 = vpop.f32.mrf.mxu1 }
 0x25f   : > { %v977_v15 = vadd.f32 %v3825_v60, %v976_v12  ;;  %v1081_v22 = vsel %vm1044_vm4, %v974_v5, %v1063_v13 }
 0x260   : > { %v2882_v16 = vpop.f32.mrf.mxu1 }
 0x261   : > { %vm1045_vm5 = vcmp.ge.f32.partialorder %v977_v15, 0.0  ;;  %v1064_v17 = vmul.f32 %v3828_v7, %v977_v15 }
 0x263   : > { %v1082_v30 = vsel %vm1045_vm5, %v977_v15, %v1064_v17 }
 0x264   : > { %v1099_v23 = vpack.c.bf16 %v1082_v30, %v1081_v22  ;;  %v981_v41 = vpop.f32.mrf.mxu1 }
 0x265   : > { %v982_v24 = vadd.f32 %v3825_v60, %v981_v41 }
 0x266   : > { %v2885_v27 = vpop.f32.mrf.mxu1  ;;  %2920 = vmatmul.mubr.msk.bf16.vlgmr.msra.gmra.mxu0 %vm595_vm3, %v1099_v23 }
 0x267   : > { %2923 = vmatprep.mubr.msk.bf16.mxu0 %vm3376_vm1, %v3375_v1  ;;  %v1065_v29 = vmul.f32 %v3828_v7, %v982_v24  ;;  %vm1046_vm6 = vcmp.ge.f32.partialorder %v982_v24, 0.0 }
 0x268   : > { %v984_v9 = vpop.f32.mrf.mxu1 }
 0x269   : > { %v985_v32 = vadd.f32 %v3825_v60, %v984_v9  ;;  %v1083_v10 = vsel %vm1046_vm6, %v982_v24, %v1065_v29 }
 0x26a   : > { %v2886_v33 = vpop.f32.mrf.mxu1 }
 0x26b   : > { %vm1047_vm7 = vcmp.ge.f32.partialorder %v985_v32, 0.0  ;;  %v1066_v36 = vmul.f32 %v3828_v7, %v985_v32 }
 0x26c   : > { %v989_v38 = vpop.f32.mrf.mxu1 }
 0x26d   : > { %v1084_v18 = vsel %vm1047_vm7, %v985_v32, %v1066_v36  ;;  %v990_v34 = vadd.f32 %v3825_v60, %v989_v38 }
 0x26e   : > { %v1100_v39 = vpack.c.bf16 %v1084_v18, %v1083_v10  ;;  %v2889_v40 = vpop.f32.mrf.mxu1 }
 0x26f   : > { %v1067_v45 = vmul.f32 %v3828_v7, %v990_v34  ;;  %vm1048_vm8 = vcmp.ge.f32.partialorder %v990_v34, 0.0 }
 0x270   : > { %v992_v44 = vpop.f32.mrf.mxu1  ;;  %2924 = vmatmul.mubr.msk.bf16.gmra.mxu0 %vm595_vm3, %v1100_v39 }
 0x271   : > { %v993_v47 = vadd.f32 %v3825_v60, %v992_v44  ;;  %2927 = vmatprep.mubr.msk.bf16.mxu0 %vm3376_vm1, %v3375_v1  ;;  %v1085_v6 = vsel %vm1048_vm8, %v990_v34, %v1067_v45 }
 0x272   : > { %v2890_v48 = vpop.f32.mrf.mxu1 }
 0x273   : > { %vm1049_vm9 = vcmp.ge.f32.partialorder %v993_v47, 0.0  ;;  %v1068_v51 = vmul.f32 %v3828_v7, %v993_v47 }
 0x275   : > { %v997_v54 = vpop.f32.mrf.mxu1  ;;  %v1086_v53 = vsel %vm1049_vm9, %v993_v47, %v1068_v51 }
 0x276   : > { %v998_v56 = vadd.f32 %v3825_v60, %v997_v54  ;;  %v1101_v52 = vpack.c.bf16 %v1086_v53, %v1085_v6 }
 0x277   : > { %v2893_v58 = vpop.f32.mrf.mxu1 }
 0x278   : > { %2928 = vmatmul.mubr.msk.bf16.gmra.mxu0 %vm595_vm3, %v1101_v52  ;;  %v1069_v59 = vmul.f32 %v3828_v7, %v998_v56  ;;  %vm1050_vm10 = vcmp.ge.f32.partialorder %v998_v56, 0.0 }
 0x279   : > { %v1000_v63 = vpop.f32.mrf.mxu1  ;;  %2931 = vmatprep.mubr.msk.bf16.mxu0 %vm3376_vm1, %v3375_v1 }
 0x27a   : > { %v1001_v2 = vadd.f32 %v3825_v60, %v1000_v63  ;;  %v1087_v46 = vsel %vm1050_vm10, %v998_v56, %v1069_v59 }
 0x27b   : > { %v2894_v26 = vpop.f32.mrf.mxu1 }
 0x27c   : > { %vm1051_vm11 = vcmp.ge.f32.partialorder %v1001_v2, 0.0  ;;  %v1070_v3 = vmul.f32 %v3828_v7, %v1001_v2 }
 0x27d   : > { %v1005_v20 = vpop.f32.mrf.mxu1 }
 0x27e   : > { %v1088_v62 = vsel %vm1051_vm11, %v1001_v2, %v1070_v3  ;;  %v1006_v5 = vadd.f32 %v3825_v60, %v1005_v20 }
 0x27f   : > { %v1102_v8 = vpack.c.bf16 %v1088_v62, %v1087_v46  ;;  %v2897_v12 = vpop.f32.mrf.mxu1 }
 0x280   : > { %v1071_v15 = vmul.f32 %v3828_v7, %v1006_v5  ;;  %vm1052_vm12 = vcmp.ge.f32.partialorder %v1006_v5, 0.0 }
 0x281   : > { %v1008_v13 = vpop.f32.mrf.mxu1  ;;  %2932 = vmatmul.mubr.msk.bf16.gmra.mxu0 %vm595_vm3, %v1102_v8 }
 0x282   : > { %v1009_v16 = vadd.f32 %v3825_v60, %v1008_v13  ;;  %2935 = vmatprep.mubr.msk.bf16.mxu0 %vm3376_vm1, %v3375_v1  ;;  %v1089_v23 = vsel %vm1052_vm12, %v1006_v5, %v1071_v15 }
 0x283   : > { %v2898_v17 = vpop.f32.mrf.mxu1 }
 0x284   : > { %vm1053_vm13 = vcmp.ge.f32.partialorder %v1009_v16, 0.0  ;;  %v1072_v22 = vmul.f32 %v3828_v7, %v1009_v16 }
 0x285   : > { %v1013_v30 = vpop.f32.mrf.mxu1 }
 0x286   : > { %v1090_v41 = vsel %vm1053_vm13, %v1009_v16, %v1072_v22  ;;  %v1014_v24 = vadd.f32 %v3825_v60, %v1013_v30 }
 0x287   : > { %v1103_v27 = vpack.c.bf16 %v1090_v41, %v1089_v23  ;;  %v2901_v9 = vpop.f32.mrf.mxu1 }
 0x288   : > { %v1073_v32 = vmul.f32 %v3828_v7, %v1014_v24  ;;  %vm1054_vm14 = vcmp.ge.f32.partialorder %v1014_v24, 0.0 }
 0x289   : > { %v1016_v29 = vpop.f32.mrf.mxu1  ;;  %2936 = vmatmul.mubr.msk.bf16.gmra.mxu0 %vm595_vm3, %v1103_v27  ;;  %v3899_v27 = vld [vmem:[%s4628_s7] ss:$0 sm:$0xff] }
 0x28a   : > { %v1017_v33 = vadd.f32 %v3825_v60, %v1016_v29  ;;  %2939 = vmatprep.mubr.msk.bf16.mxu0 %vm3376_vm1, %v3375_v1  ;;  %v1091_v18 = vsel %vm1054_vm14, %v1014_v24, %v1073_v32 }
 0x28b   : > { %v2902_v36 = vpop.f32.mrf.mxu1 }
 0x28c   : > { %vm1055_vm15 = vcmp.ge.f32.partialorder %v1017_v33, 0.0  ;;  %v1074_v38 = vmul.f32 %v3828_v7, %v1017_v33 }
 0x28d   : > { %v1021_v10 = vpop.f32.mrf.mxu1 }
 0x28e   : > { %v1092_v34 = vsel %vm1055_vm15, %v1017_v33, %v1074_v38  ;;  %v1022_v39 = vadd.f32 %v3825_v60, %v1021_v10 }
 0x28f   : > { %v1104_v40 = vpack.c.bf16 %v1092_v34, %v1091_v18  ;;  %v2905_v44 = vpop.f32.mrf.mxu1 }
 0x290   : > { %v1075_v47 = vmul.f32 %v3828_v7, %v1022_v39  ;;  %vm1056_vm0 = vcmp.ge.f32.partialorder %v1022_v39, 0.0 }
 0x291   : > { %v1024_v45 = vpop.f32.mrf.mxu1  ;;  %2940 = vmatmul.mubr.msk.bf16.gmra.mxu0 %vm595_vm3, %v1104_v40 }
 0x292   : > { %v1025_v48 = vadd.f32 %v3825_v60, %v1024_v45  ;;  %2943 = vmatprep.mubr.msk.bf16.mxu0 %vm3376_vm1, %v3375_v1  ;;  %v1093_v53 = vsel %vm1056_vm0, %v1022_v39, %v1075_v47 }
 0x293   : > { %v2906_v51 = vpop.f32.mrf.mxu1 }
 0x294   : > { %vm1057_vm2 = vcmp.ge.f32.partialorder %v1025_v48, 0.0  ;;  %v1076_v54 = vmul.f32 %v3828_v7, %v1025_v48 }
 0x295   : > { %v1029_v6 = vpop.f32.mrf.mxu1 }
 0x296   : > { %v1094_v56 = vsel %vm1057_vm2, %v1025_v48, %v1076_v54  ;;  %v1030_v52 = vadd.f32 %v3825_v60, %v1029_v6 }
 0x297   : > { %v1105_v58 = vpack.c.bf16 %v1094_v56, %v1093_v53  ;;  %v2909_v63 = vpop.f32.mrf.mxu1 }
 0x298   : > { %v1077_v2 = vmul.f32 %v3828_v7, %v1030_v52  ;;  %vm1058_vm4 = vcmp.ge.f32.partialorder %v1030_v52, 0.0 }
 0x299   : > { %v1032_v59 = vpop.f32.mrf.mxu1  ;;  %2944 = vmatmul.mubr.msk.bf16.gmra.mxu0 %vm595_vm3, %v1105_v58 }
 0x29a   : > { %v1033_v26 = vadd.f32 %v3825_v60, %v1032_v59  ;;  %2947 = vmatprep.mubr.msk.bf16.mxu0 %vm3376_vm1, %v3375_v1  ;;  %v1095_v62 = vsel %vm1058_vm4, %v1030_v52, %v1077_v2 }
 0x29b   : > { %v2910_v3 = vpop.f32.mrf.mxu1 }
 0x29c   : > { %vm1059_vm5 = vcmp.ge.f32.partialorder %v1033_v26, 0.0  ;;  %v1078_v20 = vmul.f32 %v3828_v7, %v1033_v26 }
 0x29d   : > { %v1037_v46 = vpop.f32.mrf.mxu1 }
 0x29e   : > { %v1096_v5 = vsel %vm1059_vm5, %v1033_v26, %v1078_v20  ;;  %v1038_v8 = vadd.f32 %v3825_v60, %v1037_v46 }
 0x29f   : > { %v1106_v12 = vpack.c.bf16 %v1096_v5, %v1095_v62  ;;  %v2913_v13 = vpop.f32.mrf.mxu1 }
 0x2a0   : > { %v1079_v16 = vmul.f32 %v3828_v7, %v1038_v8  ;;  %vm1060_vm6 = vcmp.ge.f32.partialorder %v1038_v8, 0.0 }
 0x2a1   : > { %v1040_v15 = vpop.f32.mrf.mxu1  ;;  %2948 = vmatmul.mubr.msk.bf16.gmra.mxu0 %vm595_vm3, %v1106_v12 }
 0x2a2   : > { %v1041_v17 = vadd.f32 %v3825_v60, %v1040_v15  ;;  %2951 = vmatprep.mubr.msk.bf16.mxu0 %vm3376_vm1, %v3375_v1  ;;  %v1097_v23 = vsel %vm1060_vm6, %v1038_v8, %v1079_v16  ;;  %v3143_v60 = vld [vmem:[%s4624_s3 + $0x18] sm:$0xff]  }
 0x2a3   : > { %v2914_v22 = vpop.f32.mrf.mxu1  ;;  %2956 = vmatpush3.bf16.msra.mxu1 %v3143_v60 }
 0x2a4   : > { %vm1061_vm7 = vcmp.ge.f32.partialorder %v1041_v17, 0.0  ;;  %v1080_v30 = vmul.f32 %v3828_v7, %v1041_v17  ;;  %2957 = vmatprep.subr.bf16.mxu1 %v3375_v1 }
 0x2a6   : > { %v1098_v41 = vsel %vm1061_vm7, %v1041_v17, %v1080_v30 }
 0x2a7   : > { %v1107_v24 = vpack.c.bf16 %v1098_v41, %v1097_v23 }
 0x2a9   : > { %2952 = vmatmul.mubr.msk.bf16.gmra.mxu0 %vm595_vm3, %v1107_v24 }
 0x2aa   : > { %2999 = vmatprep.mubr.msk.bf16.mxu0 %vm3376_vm1, %v3375_v1 }
 0x326   : > { %v1187_v7 = vpop.f32.mrf.mxu0 }
 0x327   : > { %v1188_v9 = vadd.f32 %v3899_v27, %v1187_v7 }
 0x328   : > { %v2921_v29 = vpop.f32.mrf.mxu0 }
 0x329   : > { %v3903_v32 = vadd.f32 %v1188_v9, %v3548_v14 }
 0x32a   : > { %v1190_v33 = vpop.f32.mrf.mxu0 }
 0x32b   : > { %v1191_v36 = vadd.f32 %v3899_v27, %v1190_v33  ;;  %v1291_v38 = vsel %vm595_vm3, %v3903_v32, 0.0  ;;  %v1363_v10 = vmul.f32 %v3903_v32, %v3903_v32 }
 0x32c   : > { %1292 = vadd.xlane.f32.xlu0 %v1291_v38  ;;  %v2922_v18 = vpop.f32.mrf.mxu0 }
 0x32d   : > { %v3911_v34 = vadd.f32 %v1191_v36, %v3555_v19  ;;  %v1381_v39 = vsel %vm595_vm3, %v1363_v10, 0.0 }
 0x32f   : > { %v1294_v14 = vsel %vm595_vm3, %v3911_v34, 0.0  ;;  %v1364_v40 = vmul.f32 %v3911_v34, %v3911_v34 }
 0x330   : > { %1382 = vadd.xlane.f32.xlu0 %v1381_v39  ;;  %1295 = vadd.xlane.f32.xlu1 %v1294_v14  ;;  %v1195_v44 = vpop.f32.mrf.mxu0 }
 0x331   : > { %v1196_v45 = vadd.f32 %v3899_v27, %v1195_v44  ;;  %v1384_v19 = vsel %vm595_vm3, %v1364_v40, 0.0 }
 0x332   : > { %v2925_v47 = vpop.f32.mrf.mxu0 }
 0x333   : > { %v3920_v48 = vadd.f32 %v1196_v45, %v3563_v25  ;;  %v3144_v25 = vld [vmem:[%s4624_s3 + $0x10] sm:$0xff]  }
 0x334   : > { %1385 = vadd.xlane.f32.xlu1 %v1384_v19  ;;  %v1198_v51 = vpop.f32.mrf.mxu0  ;;  %2958 = vmatpush3.bf16.msra.mxu1 %v3144_v25 }
 0x335   : > { %v1199_v54 = vadd.f32 %v3899_v27, %v1198_v51  ;;  %v1297_v6 = vsel %vm595_vm3, %v3920_v48, 0.0  ;;  %v1365_v53 = vmul.f32 %v3920_v48, %v3920_v48  ;;  %3035 = vmatprep.subr.bf16.mxu1 %v3375_v1 }
 0x336   : > { %1298 = vadd.xlane.f32.xlu0 %v1297_v6  ;;  %v2926_v56 = vpop.f32.mrf.mxu0 }
 0x337   : > { %v3929_v52 = vadd.f32 %v1199_v54, %v3571_v31  ;;  %v1387_v59 = vsel %vm595_vm3, %v1365_v53, 0.0 }
 0x338   : > { %v1203_v58 = vpop.f32.mrf.mxu0 }
 0x339   : > { %v1204_v63 = vadd.f32 %v3899_v27, %v1203_v58  ;;  %v1300_v2 = vsel %vm595_vm3, %v3929_v52, 0.0  ;;  %v1366_v26 = vmul.f32 %v3929_v52, %v3929_v52 }
 0x33a   : > { %1388 = vadd.xlane.f32.xlu0 %v1387_v59  ;;  %1301 = vadd.xlane.f32.xlu1 %v1300_v2  ;;  %v2929_v3 = vpop.f32.mrf.mxu0 }
 0x33b   : > { %v3941_v31 = vadd.f32 %v1204_v63, %v3579_v37  ;;  %v1390_v62 = vsel %vm595_vm3, %v1366_v26, 0.0 }
 0x33c   : > { %v1206_v20 = vpop.f32.mrf.mxu0 }
 0x33d   : > { %v1207_v46 = vadd.f32 %v3899_v27, %v1206_v20  ;;  %v1303_v5 = vsel %vm595_vm3, %v3941_v31, 0.0  ;;  %v1367_v8 = vmul.f32 %v3941_v31, %v3941_v31 }
 0x33e   : > { %1391 = vadd.xlane.f32.xlu1 %v1390_v62  ;;  %1304 = vadd.xlane.f32.xlu0 %v1303_v5  ;;  %v2930_v12 = vpop.f32.mrf.mxu0 }
 0x33f   : > { %v3951_v37 = vadd.f32 %v1207_v46, %v3587_v43  ;;  %v1393_v16 = vsel %vm595_vm3, %v1367_v8, 0.0 }
 0x341   : > { %v1211_v13 = vpop.f32.mrf.mxu0  ;;  %v1306_v17 = vsel %vm595_vm3, %v3951_v37, 0.0  ;;  %v1368_v22 = vmul.f32 %v3951_v37, %v3951_v37 }
 0x342   : > { %v1212_v15 = vadd.f32 %v3899_v27, %v1211_v13  ;;  %1394 = vadd.xlane.f32.xlu0 %v1393_v16  ;;  %1307 = vadd.xlane.f32.xlu1 %v1306_v17 }
 0x343   : > { %v2933_v30 = vpop.f32.mrf.mxu0  ;;  %v1396_v24 = vsel %vm595_vm3, %v1368_v22, 0.0 }
 0x344   : > { %v3960_v23 = vadd.f32 %v1212_v15, %v3595_v49 }
 0x345   : > { %v1214_v41 = vpop.f32.mrf.mxu0 }
 0x346   : > { %v1215_v43 = vadd.f32 %v3899_v27, %v1214_v41  ;;  %v1309_v60 = vsel %vm595_vm3, %v3960_v23, 0.0  ;;  %v1369_v7 = vmul.f32 %v3960_v23, %v3960_v23  ;;  %1397 = vadd.xlane.f32.xlu1 %v1396_v24 }
 0x347   : > { %1310 = vadd.xlane.f32.xlu0 %v1309_v60  ;;  %v2934_v9 = vpop.f32.mrf.mxu0 }
 0x348   : > { %v3969_v29 = vadd.f32 %v1215_v43, %v3603_v55  ;;  %v1399_v36 = vsel %vm595_vm3, %v1369_v7, 0.0 }
 0x349   : > { %v1219_v33 = vpop.f32.mrf.mxu0 }
 0x34a   : > { %v1220_v49 = vadd.f32 %v3899_v27, %v1219_v33  ;;  %v1312_v38 = vsel %vm595_vm3, %v3969_v29, 0.0  ;;  %v1370_v10 = vmul.f32 %v3969_v29, %v3969_v29 }
 0x34b   : > { %1400 = vadd.xlane.f32.xlu0 %v1399_v36  ;;  %1313 = vadd.xlane.f32.xlu1 %v1312_v38  ;;  %v2937_v18 = vpop.f32.mrf.mxu0 }
 0x34c   : > { %v3978_v39 = vadd.f32 %v1220_v49, %v3611_v61  ;;  %v1402_v40 = vsel %vm595_vm3, %v1370_v10, 0.0 }
 0x34d   : > { %v1222_v14 = vpop.f32.mrf.mxu0 }
 0x34e   : > { %v1223_v55 = vadd.f32 %v3899_v27, %v1222_v14  ;;  %v1315_v44 = vsel %vm595_vm3, %v3978_v39, 0.0  ;;  %v1371_v45 = vmul.f32 %v3978_v39, %v3978_v39 }
 0x34f   : > { %1403 = vadd.xlane.f32.xlu1 %v1402_v40  ;;  %1316 = vadd.xlane.f32.xlu0 %v1315_v44  ;;  %v2938_v47 = vpop.f32.mrf.mxu0 }
 0x350   : > { %v3987_v19 = vadd.f32 %v1223_v55, %v3619_v4  ;;  %v1405_v54 = vsel %vm595_vm3, %v1371_v45, 0.0 }
 0x351   : > { %v1227_v51 = vpop.f32.mrf.mxu0 }
 0x352   : > { %v1228_v61 = vadd.f32 %v3899_v27, %v1227_v51  ;;  %v1318_v6 = vsel %vm595_vm3, %v3987_v19, 0.0  ;;  %v1372_v53 = vmul.f32 %v3987_v19, %v3987_v19 }
 0x353   : > { %1406 = vadd.xlane.f32.xlu0 %v1405_v54  ;;  %1319 = vadd.xlane.f32.xlu1 %v1318_v6  ;;  %v2941_v56 = vpop.f32.mrf.mxu0 }
 0x354   : > { %v3996_v58 = vadd.f32 %v1228_v61, %v3630_v11  ;;  %v1408_v63 = vsel %vm595_vm3, %v1372_v53, 0.0 }
 0x355   : > { %v1230_v25 = vpop.f32.mrf.mxu0 }
 0x356   : > { %v1231_v4 = vadd.f32 %v3899_v27, %v1230_v25  ;;  %v1321_v59 = vsel %vm595_vm3, %v3996_v58, 0.0  ;;  %v1373_v2 = vmul.f32 %v3996_v58, %v3996_v58 }
 0x357   : > { %1409 = vadd.xlane.f32.xlu1 %v1408_v63  ;;  %1322 = vadd.xlane.f32.xlu0 %v1321_v59  ;;  %v2942_v26 = vpop.f32.mrf.mxu0  ;;  %v3145_v63 = vld [vmem:[%s4627_s6 + $0x18] sm:$0xff]  }
 0x358   : > { %v4005_v3 = vadd.f32 %v1231_v4, %v3642_v21  ;;  %v1411_v46 = vsel %vm595_vm3, %v1373_v2, 0.0  ;;  %2996 = vmatpush3.bf16.msra.mxu0 %v3145_v63 }
 0x359   : > { %v1235_v20 = vpop.f32.mrf.mxu0  ;;  %2997 = vmatprep.subr.bf16.mxu0 %v3375_v1 }
 0x35a   : > { %v1236_v11 = vadd.f32 %v3899_v27, %v1235_v20  ;;  %v1324_v62 = vsel %vm595_vm3, %v4005_v3, 0.0  ;;  %v1374_v5 = vmul.f32 %v4005_v3, %v4005_v3 }
 0x35b   : > { %1412 = vadd.xlane.f32.xlu0 %v1411_v46  ;;  %1325 = vadd.xlane.f32.xlu1 %v1324_v62  ;;  %v2945_v8 = vpop.f32.mrf.mxu0 }
 0x35c   : > { %v4014_v12 = vadd.f32 %v1236_v11, %v3651_v28  ;;  %v1414_v15 = vsel %vm595_vm3, %v1374_v5, 0.0 }
 0x35d   : > { %v1238_v13 = vpop.f32.mrf.mxu0 }
 0x35e   : > { %v1239_v21 = vadd.f32 %v3899_v27, %v1238_v13  ;;  %v1327_v16 = vsel %vm595_vm3, %v4014_v12, 0.0  ;;  %v1375_v17 = vmul.f32 %v4014_v12, %v4014_v12 }
 0x35f   : > { %1415 = vadd.xlane.f32.xlu1 %v1414_v15  ;;  %1328 = vadd.xlane.f32.xlu0 %v1327_v16  ;;  %v2946_v22 = vpop.f32.mrf.mxu0 }
 0x360   : > { %v4023_v30 = vadd.f32 %v1239_v21, %v3659_v35  ;;  %v1417_v43 = vsel %vm595_vm3, %v1375_v17, 0.0 }
 0x361   : > { %v1243_v41 = vpop.f32.mrf.mxu0 }
 0x362   : > { %v1244_v28 = vadd.f32 %v3899_v27, %v1243_v41  ;;  %v1330_v24 = vsel %vm595_vm3, %v4023_v30, 0.0  ;;  %v1376_v60 = vmul.f32 %v4023_v30, %v4023_v30 }
 0x363   : > { %1418 = vadd.xlane.f32.xlu0 %v1417_v43  ;;  %1331 = vadd.xlane.f32.xlu1 %v1330_v24  ;;  %v2949_v7 = vpop.f32.mrf.mxu0 }
 0x364   : > { %v4032_v9 = vadd.f32 %v1244_v28, %v3667_v42  ;;  %v1420_v49 = vsel %vm595_vm3, %v1376_v60, 0.0 }
 0x365   : > { %v1246_v33 = vpop.f32.mrf.mxu0 }
 0x366   : > { %v1247_v35 = vadd.f32 %v3899_v27, %v1246_v33  ;;  %v1333_v36 = vsel %vm595_vm3, %v4032_v9, 0.0  ;;  %v1377_v38 = vmul.f32 %v4032_v9, %v4032_v9 }
 0x367   : > { %1421 = vadd.xlane.f32.xlu1 %v1420_v49  ;;  %1334 = vadd.xlane.f32.xlu0 %v1333_v36  ;;  %v2950_v10 = vpop.f32.mrf.mxu0 }
 0x368   : > { %v4041_v18 = vadd.f32 %v1247_v35, %v3675_v50  ;;  %v1423_v55 = vsel %vm595_vm3, %v1377_v38, 0.0 }
 0x369   : > { %v1251_v14 = vpop.f32.mrf.mxu0 }
 0x36a   : > { %v1252_v42 = vadd.f32 %v3899_v27, %v1251_v14  ;;  %v1336_v40 = vsel %vm595_vm3, %v4041_v18, 0.0  ;;  %v1378_v44 = vmul.f32 %v4041_v18, %v4041_v18 }
 0x36b   : > { %1424 = vadd.xlane.f32.xlu0 %v1423_v55  ;;  %1337 = vadd.xlane.f32.xlu1 %v1336_v40  ;;  %v2953_v45 = vpop.f32.mrf.mxu0 }
 0x36c   : > { %v4050_v47 = vadd.f32 %v1252_v42, %v3683_v57  ;;  %v1426_v61 = vsel %vm595_vm3, %v1378_v44, 0.0 }
 0x36d   : > { %v1254_v51 = vpop.f32.mrf.mxu0 }
 0x36e   : > { %v1255_v50 = vadd.f32 %v3899_v27, %v1254_v51  ;;  %v1339_v54 = vsel %vm595_vm3, %v4050_v47, 0.0  ;;  %v1379_v6 = vmul.f32 %v4050_v47, %v4050_v47 }
 0x36f   : > { %1427 = vadd.xlane.f32.xlu1 %v1426_v61  ;;  %1340 = vadd.xlane.f32.xlu0 %v1339_v54  ;;  %v2954_v53 = vpop.f32.mrf.mxu0 }
 0x370   : > { %v4059_v56 = vadd.f32 %v1255_v50, %v3691_v0  ;;  %v1429_v57 = vsel %vm595_vm3, %v1379_v6, 0.0  ;;  %v3146_v0 = vld [vmem:[%s4627_s6 + $0x10] sm:$0xff]  }
 0x371   : > { %2998 = vmatpush3.bf16.msra.mxu0 %v3146_v0 }
 0x372   : > { %v1342_v25 = vsel %vm595_vm3, %v4059_v56, 0.0  ;;  %v1380_v27 = vmul.f32 %v4059_v56, %v4059_v56 }
 0x373   : > { %1430 = vadd.xlane.f32.xlu0 %v1429_v57  ;;  %1343 = vadd.xlane.f32.xlu1 %v1342_v25 }
 0x374   : > { %v1432_v4 = vsel %vm595_vm3, %v1380_v27, 0.0 }
 0x377   : > { %1433 = vadd.xlane.f32.xlu1 %v1432_v4 }
 0x3b5   : > { %v1293_v59 = vpop.xlane.xlu0 %1292 }
 0x3b6   : > { %v1345_v2 = vmul.f32 0.03125, %v1293_v59 }
 0x3b8   : > { %v1453_v11 = vmul.f32 %v1345_v2, %v1345_v2 }
 0x3b9   : > { %v1383_v26 = vpop.xlane.xlu0 %1382  ;;  %v1296_v20 = vpop.xlane.xlu1 %1295 }
 0x3ba   : > { %v1435_v46 = vmul.f32 0.03125, %v1383_v26  ;;  %v1346_v62 = vmul.f32 0.03125, %v1296_v20  ;;  %v1507_v26 = vsub.f32 %v3903_v32, %v1345_v2 }
 0x3bc   : > { %v1471_v5 = vsub.f32 %v1435_v46, %v1453_v11  ;;  %v1454_v21 = vmul.f32 %v1346_v62, %v1346_v62  ;;  %v1508_v11 = vsub.f32 %v3911_v34, %v1346_v62 }
 0x3bd   : > { %v1386_v8 = vpop.xlane.xlu1 %1385 }
 0x3be   : > { %v1489_v13 = vmax.f32 %v1471_v5, 0.0  ;;  %v1436_v15 = vmul.f32 0.03125, %v1386_v8 }
 0x3bf   : > { %v1299_v16 = vpop.xlane.xlu0 %1298 }
 0x3c0   : > { %v1525_v17 = vadd.f32 1e-05, %v1489_v13  ;;  %v1472_v22 = vsub.f32 %v1436_v15, %v1454_v21  ;;  %v4074_v41 = vmul.f32 0.03125, %v1299_v16 }
 0x3c2   : > { %v1490_v28 = vmax.f32 %v1472_v22, 0.0  ;;  %3185 = vrsqrt.f32 %v1525_v17  ;;  %v1455_v7 = vmul.f32 %v4074_v41, %v4074_v41 }
 0x3c3   : > { %v1389_v43 = vpop.xlane.xlu0 %1388  ;;  %v1302_v24 = vpop.xlane.xlu1 %1301 }
 0x3c4   : > { %v1526_v60 = vadd.f32 1e-05, %v1490_v28  ;;  %v1437_v33 = vmul.f32 0.03125, %v1389_v43  ;;  %v4078_v35 = vmul.f32 0.03125, %v1302_v24 }
 0x3c6   : > { %3187 = vrsqrt.f32 %v1526_v60  ;;  %v1473_v49 = vsub.f32 %v1437_v33, %v1455_v7  ;;  %v1456_v14 = vmul.f32 %v4078_v35, %v4078_v35 }
 0x3c7   : > { %v1392_v36 = vpop.xlane.xlu1 %1391  ;;  %v1305_v38 = vpop.xlane.xlu0 %1304 }
 0x3c8   : > { %v1491_v10 = vmax.f32 %v1473_v49, 0.0  ;;  %v1438_v42 = vmul.f32 0.03125, %v1392_v36  ;;  %v4082_v55 = vmul.f32 0.03125, %v1305_v38 }
 0x3ca   : > { %v1474_v40 = vsub.f32 %v1438_v42, %v1456_v14  ;;  %v1527_v44 = vadd.f32 1e-05, %v1491_v10  ;;  %v1457_v61 = vmul.f32 %v4082_v55, %v4082_v55 }
 0x3cb   : > { %v1395_v45 = vpop.xlane.xlu0 %1394  ;;  %v1308_v51 = vpop.xlane.xlu1 %1307 }
 0x3cc   : > { %v1492_v50 = vmax.f32 %v1474_v40, 0.0  ;;  %v1439_v54 = vmul.f32 0.03125, %v1395_v45  ;;  %v4086_v6 = vmul.f32 0.03125, %v1308_v51  ;;  %3189 = vrsqrt.f32 %v1527_v44 }
 0x3ce   : > { %v1528_v53 = vadd.f32 1e-05, %v1492_v50  ;;  %v1475_v57 = vsub.f32 %v1439_v54, %v1457_v61  ;;  %v1458_v0 = vmul.f32 %v4086_v6, %v4086_v6 }
 0x3cf   : > { %v1398_v25 = vpop.xlane.xlu1 %1397  ;;  %v3186_v4 = vpop.eup %3185 }
 0x3d0   : > { %v1311_v27 = vpop.xlane.xlu0 %1310  ;;  %3191 = vrsqrt.f32 %v1528_v53  ;;  %v1493_v63 = vmax.f32 %v1475_v57, 0.0  ;;  %v1440_v59 = vmul.f32 0.03125, %v1398_v25  ;;  %v1561_v8 = vmul.f32 %v3186_v4, %v1507_v26 }
 0x3d1   : > { %v4091_v20 = vmul.f32 0.03125, %v1311_v27  ;;  %v1509_v53 = vsub.f32 %v3920_v48, %v4074_v41  ;;  %v1510_v57 = vsub.f32 %v3929_v52, %v4078_v35 }
 0x3d2   : > { %v1476_v46 = vsub.f32 %v1440_v59, %v1458_v0  ;;  %v1529_v13 = vadd.f32 1e-05, %v1493_v63 }
 0x3d3   : > { %v3188_v5 = vpop.eup %3187  ;;  %v1459_v22 = vmul.f32 %v4091_v20, %v4091_v20 }
 0x3d4   : > { %v1401_v21 = vpop.xlane.xlu0 %1400  ;;  %v1314_v15 = vpop.xlane.xlu1 %1313  ;;  %v1562_v16 = vmul.f32 %v3188_v5, %v1508_v11  ;;  %v1494_v17 = vmax.f32 %v1476_v46, 0.0  ;;  %3193 = vrsqrt.f32 %v1529_v13 }
 0x3d5   : > { %v1441_v28 = vmul.f32 0.03125, %v1401_v21  ;;  %v4096_v43 = vmul.f32 0.03125, %v1314_v15 }
 0x3d6   : > { %v1530_v24 = vadd.f32 1e-05, %v1494_v17  ;;  %v1579_v60 = vpack.c.bf16 %v1562_v16, %v1561_v8 }
 0x3d7   : > { %v1477_v2 = vsub.f32 %v1441_v28, %v1459_v22  ;;  %v1460_v62 = vmul.f32 %v4096_v43, %v4096_v43 }
 0x3d8   : > { %v1404_v7 = vpop.xlane.xlu1 %1403  ;;  %v1317_v33 = vpop.xlane.xlu0 %1316  ;;  %3195 = vrsqrt.f32 %v1530_v24  ;;  %2960 = vmatmul.mubr.msk.bf16.vlgmr.msra.gmra.mxu1 %vm595_vm3, %v1579_v60  ;;  %v1512_v60 = vsub.f32 %v3951_v37, %v4086_v6 }
 0x3d9   : > { %v1495_v49 = vmax.f32 %v1477_v2, 0.0  ;;  %v1442_v36 = vmul.f32 0.03125, %v1404_v7  ;;  %v4100_v38 = vmul.f32 0.03125, %v1317_v33  ;;  %2963 = vmatprep.mubr.msk.bf16.mxu1 %vm3376_vm1, %v3375_v1  ;;  %v3190_v44 = vpop.eup %3189  ;;  %v1511_v2 = vsub.f32 %v3941_v31, %v4082_v55 }
 0x3da   : > { %v1563_v59 = vmul.f32 %v3190_v44, %v1509_v53 }
 0x3db   : > { %v1478_v10 = vsub.f32 %v1442_v36, %v1460_v62  ;;  %v1531_v14 = vadd.f32 1e-05, %v1495_v49  ;;  %v1461_v51 = vmul.f32 %v4100_v38, %v4100_v38 }
 0x3dc   : > { %v1407_v42 = vpop.xlane.xlu0 %1406  ;;  %v1320_v40 = vpop.xlane.xlu1 %1319 }
 0x3dd   : > { %v1496_v45 = vmax.f32 %v1478_v10, 0.0  ;;  %v1443_v50 = vmul.f32 0.03125, %v1407_v42  ;;  %v4107_v61 = vmul.f32 0.03125, %v1320_v40  ;;  %v3192_v54 = vpop.eup %3191  ;;  %3197 = vrsqrt.f32 %v1531_v14 }
 0x3de   : > { %v1564_v26 = vmul.f32 %v3192_v54, %v1510_v57 }
 0x3df   : > { %v1532_v25 = vadd.f32 1e-05, %v1496_v45  ;;  %v1479_v27 = vsub.f32 %v1443_v50, %v1461_v51  ;;  %v1462_v4 = vmul.f32 %v4107_v61, %v4107_v61 }
 0x3e0   : > { %v1410_v63 = vpop.xlane.xlu1 %1409  ;;  %v1323_v0 = vpop.xlane.xlu0 %1322  ;;  %v1580_v8 = vpack.c.bf16 %v1564_v26, %v1563_v59 }
 0x3e1   : > { %3199 = vrsqrt.f32 %v1532_v25  ;;  %v1497_v11 = vmax.f32 %v1479_v27, 0.0  ;;  %v1444_v46 = vmul.f32 0.03125, %v1410_v63  ;;  %v4115_v5 = vmul.f32 0.03125, %v1323_v0  ;;  %v3194_v15 = vpop.eup %3193 }
 0x3e2   : > { %2964 = vmatmul.mubr.msk.bf16.gmra.mxu1 %vm595_vm3, %v1580_v8  ;;  %v1565_v10 = vmul.f32 %v3194_v15, %v1511_v2  ;;  %v1513_v63 = vsub.f32 %v3960_v23, %v4091_v20  ;;  %v1514_v0 = vsub.f32 %v3969_v29, %v4096_v43 }
 0x3e3   : > { %v1480_v41 = vsub.f32 %v1444_v46, %v1462_v4  ;;  %v1533_v13 = vadd.f32 1e-05, %v1497_v11  ;;  %v1463_v17 = vmul.f32 %v4115_v5, %v4115_v5  ;;  %2967 = vmatprep.mubr.msk.bf16.mxu1 %vm3376_vm1, %v3375_v1 }
 0x3e4   : > { %v1413_v35 = vpop.xlane.xlu0 %1412  ;;  %v1326_v21 = vpop.xlane.xlu1 %1325 }
 0x3e5   : > { %v1498_v16 = vmax.f32 %v1480_v41, 0.0  ;;  %v1445_v22 = vmul.f32 0.03125, %v1413_v35  ;;  %v4120_v28 = vmul.f32 0.03125, %v1326_v21  ;;  %v3196_v24 = vpop.eup %3195  ;;  %3201 = vrsqrt.f32 %v1533_v13 }
 0x3e6   : > { %v1566_v14 = vmul.f32 %v3196_v24, %v1512_v60 }
 0x3e7   : > { %v1534_v62 = vadd.f32 1e-05, %v1498_v16  ;;  %v1481_v7 = vsub.f32 %v1445_v22, %v1463_v17  ;;  %v1464_v33 = vmul.f32 %v4120_v28, %v4120_v28 }
 0x3e8   : > { %v1416_v49 = vpop.xlane.xlu1 %1415  ;;  %v1329_v36 = vpop.xlane.xlu0 %1328  ;;  %v1581_v45 = vpack.c.bf16 %v1566_v14, %v1565_v10 }
 0x3e9   : > { %3203 = vrsqrt.f32 %v1534_v62  ;;  %v1499_v42 = vmax.f32 %v1481_v7, 0.0  ;;  %v1446_v40 = vmul.f32 0.03125, %v1416_v49  ;;  %v4130_v44 = vmul.f32 0.03125, %v1329_v36 }
 0x3ea   : > { %2968 = vmatmul.mubr.msk.bf16.gmra.mxu1 %vm595_vm3, %v1581_v45  ;;  %v3198_v54 = vpop.eup %3197  ;;  %v1515_v49 = vsub.f32 %v3978_v39, %v4100_v38  ;;  %v1516_v36 = vsub.f32 %v3987_v19, %v4107_v61 }
 0x3eb   : > { %v1482_v55 = vsub.f32 %v1446_v40, %v1464_v33  ;;  %v1535_v51 = vadd.f32 1e-05, %v1499_v42  ;;  %v1465_v57 = vmul.f32 %v4130_v44, %v4130_v44  ;;  %2971 = vmatprep.mubr.msk.bf16.mxu1 %vm3376_vm1, %v3375_v1  ;;  %v1567_v41 = vmul.f32 %v3198_v54, %v1513_v63 }
 0x3ec   : > { %v1419_v6 = vpop.xlane.xlu0 %1418  ;;  %v1332_v50 = vpop.xlane.xlu1 %1331 }
 0x3ed   : > { %v1500_v53 = vmax.f32 %v1482_v55, 0.0  ;;  %v1447_v25 = vmul.f32 0.03125, %v1419_v6  ;;  %v4135_v27 = vmul.f32 0.03125, %v1332_v50  ;;  %3205 = vrsqrt.f32 %v1535_v51 }
 0x3ee   : > { %v3200_v4 = vpop.eup %3199 }
 0x3ef   : > { %v1536_v59 = vadd.f32 1e-05, %v1500_v53  ;;  %v1483_v26 = vsub.f32 %v1447_v25, %v1465_v57  ;;  %v1466_v11 = vmul.f32 %v4135_v27, %v4135_v27  ;;  %v1568_v13 = vmul.f32 %v3200_v4, %v1514_v0 }
 0x3f0   : > { %v1422_v46 = vpop.xlane.xlu1 %1421  ;;  %v1335_v8 = vpop.xlane.xlu0 %1334 }
 0x3f1   : > { %3207 = vrsqrt.f32 %v1536_v59  ;;  %v1501_v35 = vmax.f32 %v1483_v26, 0.0  ;;  %v1448_v21 = vmul.f32 0.03125, %v1422_v46  ;;  %v4145_v15 = vmul.f32 0.03125, %v1335_v8 }
 0x3f2   : > { %v1582_v16 = vpack.c.bf16 %v1568_v13, %v1567_v41  ;;  %v3202_v24 = vpop.eup %3201  ;;  %v1517_v46 = vsub.f32 %v3996_v58, %v4115_v5  ;;  %v1518_v8 = vsub.f32 %v4005_v3, %v4120_v28  ;;  %v1519_v5 = vsub.f32 %v4014_v12, %v4130_v44 }
 0x3f3   : > { %v1537_v20 = vadd.f32 1e-05, %v1501_v35  ;;  %v1484_v17 = vsub.f32 %v1448_v21, %v1466_v11  ;;  %v1467_v60 = vmul.f32 %v4145_v15, %v4145_v15  ;;  %v1569_v55 = vmul.f32 %v3202_v24, %v1515_v49 }
 0x3f4   : > { %2972 = vmatmul.mubr.msk.bf16.gmra.mxu1 %vm595_vm3, %v1582_v16  ;;  %v1425_v43 = vpop.xlane.xlu0 %1424  ;;  %v1338_v22 = vpop.xlane.xlu1 %1337  ;;  %v1520_v28 = vsub.f32 %v4023_v30, %v4135_v27  ;;  %v1521_v44 = vsub.f32 %v4032_v9, %v4145_v15 }
 0x3f5   : > { %v1502_v2 = vmax.f32 %v1484_v17, 0.0  ;;  %v1449_v62 = vmul.f32 0.03125, %v1425_v43  ;;  %v4150_v7 = vmul.f32 0.03125, %v1338_v22  ;;  %2975 = vmatprep.mubr.msk.bf16.mxu1 %vm3376_vm1, %v3375_v1  ;;  %3209 = vrsqrt.f32 %v1537_v20 }
 0x3f6   : > { %v3204_v33 = vpop.eup %3203 }
 0x3f7   : > { %v1538_v10 = vadd.f32 1e-05, %v1502_v2  ;;  %v1485_v14 = vsub.f32 %v1449_v62, %v1467_v60  ;;  %v1468_v42 = vmul.f32 %v4150_v7, %v4150_v7  ;;  %v1570_v51 = vmul.f32 %v3204_v33, %v1516_v36 }
 0x3f8   : > { %v1428_v40 = vpop.xlane.xlu1 %1427  ;;  %v1341_v45 = vpop.xlane.xlu0 %1340  ;;  %v1522_v27 = vsub.f32 %v4041_v18, %v4150_v7 }
 0x3f9   : > { %3211 = vrsqrt.f32 %v1538_v10  ;;  %v1503_v6 = vmax.f32 %v1485_v14, 0.0  ;;  %v1450_v50 = vmul.f32 0.03125, %v1428_v40  ;;  %v1361_v54 = vmul.f32 0.03125, %v1341_v45 }
 0x3fa   : > { %v1583_v53 = vpack.c.bf16 %v1570_v51, %v1569_v55  ;;  %v3206_v4 = vpop.eup %3205 }
 0x3fb   : > { %v1539_v57 = vadd.f32 1e-05, %v1503_v6  ;;  %v1486_v38 = vsub.f32 %v1450_v50, %v1468_v42  ;;  %v1469_v0 = vmul.f32 %v1361_v54, %v1361_v54  ;;  %v1571_v21 = vmul.f32 %v3206_v4, %v1517_v46 }
 0x3fc   : > { %2976 = vmatmul.mubr.msk.bf16.gmra.mxu1 %vm595_vm3, %v1583_v53  ;;  %v1431_v61 = vpop.xlane.xlu0 %1430  ;;  %v1344_v25 = vpop.xlane.xlu1 %1343  ;;  %v1523_v50 = vsub.f32 %v4050_v47, %v1361_v54  ;;  %v3148_v54 = vld [vmem:[%s4629_s8] sm:$0xff]  }
 0x3fd   : > { %v1504_v63 = vmax.f32 %v1486_v38, 0.0  ;;  %v1451_v59 = vmul.f32 0.03125, %v1431_v61  ;;  %v1362_v26 = vmul.f32 0.03125, %v1344_v25  ;;  %2979 = vmatprep.mubr.msk.bf16.mxu1 %vm3376_vm1, %v3375_v1  ;;  %3213 = vrsqrt.f32 %v1539_v57  ;;  %v3147_v61 = vld [vmem:[%s4629_s8 + $0x8] sm:$0xff]   ;;  %v4199_v25 = vld [vmem:[%s4625_s4 + $0x1] ss:$0 sm:$0xff] }
 0x3fe   : > { %v3208_v11 = vpop.eup %3207  ;;  %3036 = vmatpush3.bf16.msra.mxu1 %v3147_v61 }
 0x3ff   : > { %v1540_v41 = vadd.f32 1e-05, %v1504_v63  ;;  %v1487_v13 = vsub.f32 %v1451_v59, %v1469_v0  ;;  %v1572_v16 = vmul.f32 %v3208_v11, %v1518_v8  ;;  %v1470_v17 = vmul.f32 %v1362_v26, %v1362_v26  ;;  %3037 = vmatprep.subr.bf16.mxu1 %v3375_v1 }
 0x400   : > { %v1434_v35 = vpop.xlane.xlu1 %1433  ;;  %v1524_v53 = vsub.f32 %v4059_v56, %v1362_v26  ;;  %v4202_v0 = vstv %s2637_s12  ;;  %s2508_s12 = sshll.u32 %s4415_s30, 4  ;;  %s4576_s12 = int_to_ptr.vmem [resolvable:$true] %s2508_s12 }
 0x401   : > { %3215 = vrsqrt.f32 %v1540_v41  ;;  %v1505_v20 = vmax.f32 %v1487_v13, 0.0  ;;  %v1452_v43 = vmul.f32 0.03125, %v1434_v35  ;;  %v1584_v22 = vpack.c.bf16 %v1572_v16, %v1571_v21  ;;  %s3308_s25 = scalar_lea.vmem %s4576_s12, 1152  ;;  %p3315_p13 = scmp.lt.s32.totalorder %s4576_s12, %s3313_s27 }
 0x402   : > { %v3210_v60 = vpop.eup %3209  ;;  %3038 = vmatpush3.bf16.msra.mxu1 %v3148_v54  ;;  %p3309_p9 = scmp.ne.s32.totalorder %s4576_s12, %s3308_s25  ;;  %p3316_p0 = scmp.lt.s32.totalorder %s3314_s29, %s3308_s25 }
 0x403   : > { %v1541_v24 = vadd.f32 1e-05, %v1505_v20  ;;  %v1488_v2 = vsub.f32 %v1452_v43, %v1470_v17  ;;  %v1573_v36 = vmul.f32 %v3210_v60, %v1519_v5 }
 0x404   : > { %2980 = vmatmul.mubr.msk.bf16.gmra.mxu1 %vm595_vm3, %v1584_v22  ;;  %p3310_p11 = pnand %p3309_p9, %p3473_p5  ;;  %p3317_p1 = por %p3316_p0, %p3315_p13 }
 0x405   : > { %v1506_v62 = vmax.f32 %v1488_v2, 0.0  ;;  %2983 = vmatprep.mubr.msk.bf16.mxu1 %vm3376_vm1, %v3375_v1  ;;  %3217 = vrsqrt.f32 %v1541_v24 }
 0x406   : > { %v3212_v33 = vpop.eup %3211  ;;  %p3311_p12 = pneg %p3310_p11 }
 0x407   : > { %v1542_v49 = vadd.f32 1e-05, %v1506_v62  ;;  %v1574_v10 = vmul.f32 %v3212_v33, %v1520_v28 }
 0x408   : > { %p3318_p2 = pnand %p3317_p1, %p3311_p12 }
 0x409   : > { %3219 = vrsqrt.f32 %v1542_v49  ;;  %v1585_v14 = vpack.c.bf16 %v1574_v10, %v1573_v36 }
 0x40a   : > { %v3214_v42 = vpop.eup %3213 }
 0x40b   : > { %v1575_v45 = vmul.f32 %v3214_v42, %v1521_v44 }
 0x40c   : > { %2984 = vmatmul.mubr.msk.bf16.gmra.mxu1 %vm595_vm3, %v1585_v14 }
 0x40d   : > { %2987 = vmatprep.mubr.msk.bf16.mxu1 %vm3376_vm1, %v3375_v1 }
 0x40e   : > { %v3216_v40 = vpop.eup %3215 }
 0x40f   : > { %v1576_v55 = vmul.f32 %v3216_v40, %v1522_v27 }
 0x411   : > { %v1586_v51 = vpack.c.bf16 %v1576_v55, %v1575_v45 }
 0x412   : > { %v3218_v6 = vpop.eup %3217 }
 0x413   : > { %v1577_v57 = vmul.f32 %v3218_v6, %v1523_v50 }
 0x414   : > { %2988 = vmatmul.mubr.msk.bf16.gmra.mxu1 %vm595_vm3, %v1586_v51 }
 0x415   : > { %2991 = vmatprep.mubr.msk.bf16.mxu1 %vm3376_vm1, %v3375_v1 }
 0x416   : > { %v3220_v15 = vpop.eup %3219 }
 0x417   : > { %v1578_v7 = vmul.f32 %v3220_v15, %v1524_v53 }
 0x419   : > { %v1587_v38 = vpack.c.bf16 %v1578_v7, %v1577_v57 }
 0x41c   : > { %2992 = vmatmul.mubr.msk.bf16.gmra.mxu1 %vm595_vm3, %v1587_v38 }
 0x41d   : > { %3039 = vmatprep.mubr.msk.bf16.mxu1 %vm3376_vm1, %v3375_v1 }
 0x498   : > { %v1667_v4 = vpop.f32.mrf.mxu1 }
 0x499   : > { %v1668_v63 = vadd.f32 %v4199_v25, %v1667_v4 }
 0x49a   : > { %v2961_v59 = vpop.f32.mrf.mxu1 }
 0x49b   : > { %v1757_v11 = vmul.f32 %v4202_v0, %v1668_v63  ;;  %vm1738_vm8 = vcmp.ge.f32.partialorder %v1668_v63, 0.0 }
 0x49c   : > { %v1670_v26 = vpop.f32.mrf.mxu1 }
 0x49d   : > { %v1671_v46 = vadd.f32 %v4199_v25, %v1670_v26  ;;  %v1775_v13 = vsel %vm1738_vm8, %v1668_v63, %v1757_v11 }
 0x49e   : > { %v2962_v8 = vpop.f32.mrf.mxu1 }
 0x49f   : > { %vm1739_vm9 = vcmp.ge.f32.partialorder %v1671_v46, 0.0  ;;  %v1758_v41 = vmul.f32 %v4202_v0, %v1671_v46 }
 0x4a1   : > { %v1776_v35 = vsel %vm1739_vm9, %v1671_v46, %v1758_v41 }
 0x4a2   : > { %v1793_v21 = vpack.c.bf16 %v1776_v35, %v1775_v13  ;;  %v1675_v16 = vpop.f32.mrf.mxu1 }
 0x4a3   : > { %v1676_v20 = vadd.f32 %v4199_v25, %v1675_v16 }
 0x4a4   : > { %3000 = vmatmul.mubr.msk.bf16.vlgmr.msra.gmra.mxu0 %vm595_vm3, %v1793_v21  ;;  %v2965_v17 = vpop.f32.mrf.mxu1 }
 0x4a5   : > { %3003 = vmatprep.mubr.msk.bf16.mxu0 %vm3376_vm1, %v3375_v1  ;;  %v1759_v22 = vmul.f32 %v4202_v0, %v1676_v20  ;;  %vm1740_vm10 = vcmp.ge.f32.partialorder %v1676_v20, 0.0 }
 0x4a6   : > { %v1678_v43 = vpop.f32.mrf.mxu1 }
 0x4a7   : > { %v1679_v24 = vadd.f32 %v4199_v25, %v1678_v43  ;;  %v1777_v28 = vsel %vm1740_vm10, %v1676_v20, %v1759_v22 }
 0x4a8   : > { %v2966_v2 = vpop.f32.mrf.mxu1 }
 0x4a9   : > { %vm1741_vm11 = vcmp.ge.f32.partialorder %v1679_v24, 0.0  ;;  %v1760_v60 = vmul.f32 %v4202_v0, %v1679_v24 }
 0x4aa   : > { %v1683_v5 = vpop.f32.mrf.mxu1 }
 0x4ab   : > { %v1778_v62 = vsel %vm1741_vm11, %v1679_v24, %v1760_v60  ;;  %v1684_v33 = vadd.f32 %v4199_v25, %v1683_v5 }
 0x4ac   : > { %v1794_v49 = vpack.c.bf16 %v1778_v62, %v1777_v28  ;;  %v2969_v36 = vpop.f32.mrf.mxu1 }
 0x4ad   : > { %v1761_v14 = vmul.f32 %v4202_v0, %v1684_v33  ;;  %vm1742_vm12 = vcmp.ge.f32.partialorder %v1684_v33, 0.0 }
 0x4ae   : > { %v1686_v10 = vpop.f32.mrf.mxu1  ;;  %3004 = vmatmul.mubr.msk.bf16.gmra.mxu0 %vm595_vm3, %v1794_v49 }
 0x4af   : > { %v1687_v42 = vadd.f32 %v4199_v25, %v1686_v10  ;;  %3007 = vmatprep.mubr.msk.bf16.mxu0 %vm3376_vm1, %v3375_v1  ;;  %v1779_v45 = vsel %vm1742_vm12, %v1684_v33, %v1761_v14 }
 0x4b0   : > { %v2970_v44 = vpop.f32.mrf.mxu1 }
 0x4b1   : > { %vm1743_vm13 = vcmp.ge.f32.partialorder %v1687_v42, 0.0  ;;  %v1762_v27 = vmul.f32 %v4202_v0, %v1687_v42 }
 0x4b3   : > { %v1780_v55 = vsel %vm1743_vm13, %v1687_v42, %v1762_v27 }
 0x4b4   : > { %v1691_v40 = vpop.f32.mrf.mxu1  ;;  %v1795_v6 = vpack.c.bf16 %v1780_v55, %v1779_v45 }
 0x4b5   : > { %v1692_v51 = vadd.f32 %v4199_v25, %v1691_v40 }
 0x4b6   : > { %v2973_v50 = vpop.f32.mrf.mxu1  ;;  %3008 = vmatmul.mubr.msk.bf16.gmra.mxu0 %vm595_vm3, %v1795_v6 }
 0x4b7   : > { %v1763_v15 = vmul.f32 %v4202_v0, %v1692_v51  ;;  %3011 = vmatprep.mubr.msk.bf16.mxu0 %vm3376_vm1, %v3375_v1  ;;  %vm1744_vm14 = vcmp.ge.f32.partialorder %v1692_v51, 0.0 }
 0x4b8   : > { %v1694_v53 = vpop.f32.mrf.mxu1 }
 0x4b9   : > { %v1695_v57 = vadd.f32 %v4199_v25, %v1694_v53  ;;  %v1781_v54 = vsel %vm1744_vm14, %v1692_v51, %v1763_v15 }
 0x4ba   : > { %v2974_v7 = vpop.f32.mrf.mxu1 }
 0x4bb   : > { %vm1745_vm15 = vcmp.ge.f32.partialorder %v1695_v57, 0.0  ;;  %v1764_v38 = vmul.f32 %v4202_v0, %v1695_v57 }
 0x4bc   : > { %v1699_v61 = vpop.f32.mrf.mxu1 }
 0x4bd   : > { %v1782_v4 = vsel %vm1745_vm15, %v1695_v57, %v1764_v38  ;;  %v1700_v63 = vadd.f32 %v4199_v25, %v1699_v61 }
 0x4be   : > { %v1796_v59 = vpack.c.bf16 %v1782_v4, %v1781_v54  ;;  %v2977_v26 = vpop.f32.mrf.mxu1 }
 0x4bf   : > { %v1765_v46 = vmul.f32 %v4202_v0, %v1700_v63  ;;  %vm1746_vm0 = vcmp.ge.f32.partialorder %v1700_v63, 0.0 }
 0x4c0   : > { %v1702_v11 = vpop.f32.mrf.mxu1  ;;  %3012 = vmatmul.mubr.msk.bf16.gmra.mxu0 %vm595_vm3, %v1796_v59 }
 0x4c1   : > { %v1703_v8 = vadd.f32 %v4199_v25, %v1702_v11  ;;  %3015 = vmatprep.mubr.msk.bf16.mxu0 %vm3376_vm1, %v3375_v1  ;;  %v1783_v21 = vsel %vm1746_vm0, %v1700_v63, %v1765_v46 }
 0x4c2   : > { %v2978_v41 = vpop.f32.mrf.mxu1 }
 0x4c3   : > { %vm1747_vm2 = vcmp.ge.f32.partialorder %v1703_v8, 0.0  ;;  %v1766_v13 = vmul.f32 %v4202_v0, %v1703_v8 }
 0x4c4   : > { %v1707_v35 = vpop.f32.mrf.mxu1 }
 0x4c5   : > { %v1784_v16 = vsel %vm1747_vm2, %v1703_v8, %v1766_v13  ;;  %v1708_v20 = vadd.f32 %v4199_v25, %v1707_v35 }
 0x4c6   : > { %v1797_v17 = vpack.c.bf16 %v1784_v16, %v1783_v21  ;;  %v2981_v43 = vpop.f32.mrf.mxu1 }
 0x4c7   : > { %v1767_v24 = vmul.f32 %v4202_v0, %v1708_v20  ;;  %vm1748_vm4 = vcmp.ge.f32.partialorder %v1708_v20, 0.0 }
 0x4c8   : > { %v1710_v22 = vpop.f32.mrf.mxu1  ;;  %3016 = vmatmul.mubr.msk.bf16.gmra.mxu0 %vm595_vm3, %v1797_v17  ;;  %v4267_v17 = vld [vmem:[%s4628_s7 + $0x1] ss:$0 sm:$0xff] }
 0x4c9   : > { %v1711_v2 = vadd.f32 %v4199_v25, %v1710_v22  ;;  %3019 = vmatprep.mubr.msk.bf16.mxu0 %vm3376_vm1, %v3375_v1  ;;  %v1785_v62 = vsel %vm1748_vm4, %v1708_v20, %v1767_v24 }
 0x4ca   : > { %v2982_v60 = vpop.f32.mrf.mxu1 }
 0x4cb   : > { %vm1749_vm5 = vcmp.ge.f32.partialorder %v1711_v2, 0.0  ;;  %v1768_v5 = vmul.f32 %v4202_v0, %v1711_v2 }
 0x4cc   : > { %v1715_v28 = vpop.f32.mrf.mxu1 }
 0x4cd   : > { %v1786_v33 = vsel %vm1749_vm5, %v1711_v2, %v1768_v5  ;;  %v1716_v49 = vadd.f32 %v4199_v25, %v1715_v28 }
 0x4ce   : > { %v1798_v36 = vpack.c.bf16 %v1786_v33, %v1785_v62  ;;  %v2985_v10 = vpop.f32.mrf.mxu1 }
 0x4cf   : > { %v1769_v42 = vmul.f32 %v4202_v0, %v1716_v49  ;;  %vm1750_vm6 = vcmp.ge.f32.partialorder %v1716_v49, 0.0 }
 0x4d0   : > { %v1718_v14 = vpop.f32.mrf.mxu1  ;;  %3020 = vmatmul.mubr.msk.bf16.gmra.mxu0 %vm595_vm3, %v1798_v36 }
 0x4d1   : > { %v1719_v44 = vadd.f32 %v4199_v25, %v1718_v14  ;;  %3023 = vmatprep.mubr.msk.bf16.mxu0 %vm3376_vm1, %v3375_v1  ;;  %v1787_v55 = vsel %vm1750_vm6, %v1716_v49, %v1769_v42 }
 0x4d2   : > { %v2986_v27 = vpop.f32.mrf.mxu1 }
 0x4d3   : > { %vm1751_vm7 = vcmp.ge.f32.partialorder %v1719_v44, 0.0  ;;  %v1770_v40 = vmul.f32 %v4202_v0, %v1719_v44 }
 0x4d4   : > { %v1723_v45 = vpop.f32.mrf.mxu1 }
 0x4d5   : > { %v1788_v51 = vsel %vm1751_vm7, %v1719_v44, %v1770_v40  ;;  %v1724_v6 = vadd.f32 %v4199_v25, %v1723_v45 }
 0x4d6   : > { %v1799_v50 = vpack.c.bf16 %v1788_v51, %v1787_v55  ;;  %v2989_v53 = vpop.f32.mrf.mxu1 }
 0x4d7   : > { %v1771_v57 = vmul.f32 %v4202_v0, %v1724_v6  ;;  %vm1752_vm8 = vcmp.ge.f32.partialorder %v1724_v6, 0.0 }
 0x4d8   : > { %v1726_v15 = vpop.f32.mrf.mxu1  ;;  %3024 = vmatmul.mubr.msk.bf16.gmra.mxu0 %vm595_vm3, %v1799_v50 }
 0x4d9   : > { %v1727_v7 = vadd.f32 %v4199_v25, %v1726_v15  ;;  %3027 = vmatprep.mubr.msk.bf16.mxu0 %vm3376_vm1, %v3375_v1  ;;  %v1789_v4 = vsel %vm1752_vm8, %v1724_v6, %v1771_v57 }
 0x4da   : > { %v2990_v38 = vpop.f32.mrf.mxu1 }
 0x4db   : > { %vm1753_vm9 = vcmp.ge.f32.partialorder %v1727_v7, 0.0  ;;  %v1772_v61 = vmul.f32 %v4202_v0, %v1727_v7 }
 0x4dc   : > { %v1731_v54 = vpop.f32.mrf.mxu1 }
 0x4dd   : > { %v1790_v63 = vsel %vm1753_vm9, %v1727_v7, %v1772_v61  ;;  %v1732_v59 = vadd.f32 %v4199_v25, %v1731_v54 }
 0x4de   : > { %v1800_v26 = vpack.c.bf16 %v1790_v63, %v1789_v4  ;;  %v2993_v11 = vpop.f32.mrf.mxu1 }
 0x4df   : > { %v1773_v8 = vmul.f32 %v4202_v0, %v1732_v59  ;;  %vm1754_vm10 = vcmp.ge.f32.partialorder %v1732_v59, 0.0 }
 0x4e0   : > { %v1734_v46 = vpop.f32.mrf.mxu1  ;;  %3028 = vmatmul.mubr.msk.bf16.gmra.mxu0 %vm595_vm3, %v1800_v26 }
 0x4e1   : > { %v1735_v41 = vadd.f32 %v4199_v25, %v1734_v46  ;;  %3031 = vmatprep.mubr.msk.bf16.mxu0 %vm3376_vm1, %v3375_v1  ;;  %v1791_v21 = vsel %vm1754_vm10, %v1732_v59, %v1773_v8 }
 0x4e2   : > { %v2994_v13 = vpop.f32.mrf.mxu1 }
 0x4e3   : > { %vm1755_vm11 = vcmp.ge.f32.partialorder %v1735_v41, 0.0  ;;  %v1774_v35 = vmul.f32 %v4202_v0, %v1735_v41 }
 0x4e5   : > { %v1792_v16 = vsel %vm1755_vm11, %v1735_v41, %v1774_v35 }
 0x4e6   : > { %v1801_v20 = vpack.c.bf16 %v1792_v16, %v1791_v21 }
 0x4e8   : > { %3032 = vmatmul.mubr.msk.bf16.gmra.mxu0 %vm595_vm3, %v1801_v20 }
 0x564   : > { %v1881_v43 = vpop.f32.mrf.mxu0 }
 0x565   : > { %v1882_v22 = vadd.f32 %v4267_v17, %v1881_v43 }
 0x566   : > { %v3001_v25 = vpop.f32.mrf.mxu0 }
 0x567   : > { %v1952_v0 = vadd.f32 %v1882_v22, %v3903_v32 }
 0x568   : > { %v1884_v24 = vpop.f32.mrf.mxu0 }
 0x569   : > { %v1885_v2 = vadd.f32 %v4267_v17, %v1884_v24 }
 0x56a   : > { %v3002_v60 = vpop.f32.mrf.mxu0 }
 0x56b   : > { %v1953_v5 = vadd.f32 %v1885_v2, %v3911_v34 }
 0x56d   : > { %v1970_v28 = vpack.c.bf16 %v1953_v5, %v1952_v0 }
 0x56e   : > { %v1889_v62 = vpop.f32.mrf.mxu0 }
 0x56f   : > { %3040 = vmatmul.mubr.msk.bf16.vlgmr.msra.gmra.mxu1 %vm595_vm3, %v1970_v28  ;;  %v1890_v49 = vadd.f32 %v4267_v17, %v1889_v62 }
 0x570   : > { %3043 = vmatprep.mubr.msk.bf16.mxu1 %vm3376_vm1, %v3375_v1  ;;  %v3005_v33 = vpop.f32.mrf.mxu0 }
 0x571   : > { %v1954_v42 = vadd.f32 %v1890_v49, %v3920_v48 }
 0x572   : > { %v1892_v36 = vpop.f32.mrf.mxu0 }
 0x573   : > { %v1893_v10 = vadd.f32 %v4267_v17, %v1892_v36 }
 0x574   : > { %v3006_v14 = vpop.f32.mrf.mxu0 }
 0x575   : > { %v1955_v32 = vadd.f32 %v1893_v10, %v3929_v52 }
 0x576   : > { %v1897_v44 = vpop.f32.mrf.mxu0 }
 0x577   : > { %v1971_v34 = vpack.c.bf16 %v1955_v32, %v1954_v42  ;;  %v1898_v40 = vadd.f32 %v4267_v17, %v1897_v44 }
 0x578   : > { %v3009_v27 = vpop.f32.mrf.mxu0 }
 0x579   : > { %3044 = vmatmul.mubr.msk.bf16.gmra.mxu1 %vm595_vm3, %v1971_v34  ;;  %v1956_v6 = vadd.f32 %v1898_v40, %v3941_v31 }
 0x57a   : > { %v1900_v45 = vpop.f32.mrf.mxu0  ;;  %3047 = vmatprep.mubr.msk.bf16.mxu1 %vm3376_vm1, %v3375_v1 }
 0x57b   : > { %v1901_v55 = vadd.f32 %v4267_v17, %v1900_v45 }
 0x57c   : > { %v3010_v51 = vpop.f32.mrf.mxu0 }
 0x57d   : > { %v1957_v48 = vadd.f32 %v1901_v55, %v3951_v37 }
 0x57f   : > { %v1972_v52 = vpack.c.bf16 %v1957_v48, %v1956_v6 }
 0x580   : > { %v1905_v50 = vpop.f32.mrf.mxu0 }
 0x581   : > { %v1906_v15 = vadd.f32 %v4267_v17, %v1905_v50  ;;  %3048 = vmatmul.mubr.msk.bf16.gmra.mxu1 %vm595_vm3, %v1972_v52 }
 0x582   : > { %v3013_v53 = vpop.f32.mrf.mxu0  ;;  %3051 = vmatprep.mubr.msk.bf16.mxu1 %vm3376_vm1, %v3375_v1 }
 0x583   : > { %v1958_v61 = vadd.f32 %v1906_v15, %v3960_v23 }
 0x584   : > { %v1908_v57 = vpop.f32.mrf.mxu0 }
 0x585   : > { %v1909_v7 = vadd.f32 %v4267_v17, %v1908_v57 }
 0x586   : > { %v3014_v38 = vpop.f32.mrf.mxu0 }
 0x587   : > { %v1959_v31 = vadd.f32 %v1909_v7, %v3969_v29 }
 0x588   : > { %v1913_v54 = vpop.f32.mrf.mxu0 }
 0x589   : > { %v1973_v37 = vpack.c.bf16 %v1959_v31, %v1958_v61  ;;  %v1914_v63 = vadd.f32 %v4267_v17, %v1913_v54 }
 0x58a   : > { %v3017_v4 = vpop.f32.mrf.mxu0 }
 0x58b   : > { %3052 = vmatmul.mubr.msk.bf16.gmra.mxu1 %vm595_vm3, %v1973_v37  ;;  %v1960_v46 = vadd.f32 %v1914_v63, %v3978_v39 }
 0x58c   : > { %v1916_v59 = vpop.f32.mrf.mxu0  ;;  %3055 = vmatprep.mubr.msk.bf16.mxu1 %vm3376_vm1, %v3375_v1 }
 0x58d   : > { %v1917_v26 = vadd.f32 %v4267_v17, %v1916_v59 }
 0x58e   : > { %v3018_v11 = vpop.f32.mrf.mxu0 }
 0x58f   : > { %v1961_v23 = vadd.f32 %v1917_v26, %v3987_v19 }
 0x590   : > { %v1921_v8 = vpop.f32.mrf.mxu0 }
 0x591   : > { %v1974_v29 = vpack.c.bf16 %v1961_v23, %v1960_v46  ;;  %v1922_v13 = vadd.f32 %v4267_v17, %v1921_v8 }
 0x592   : > { %v3021_v41 = vpop.f32.mrf.mxu0 }
 0x593   : > { %3056 = vmatmul.mubr.msk.bf16.gmra.mxu1 %vm595_vm3, %v1974_v29  ;;  %v1962_v20 = vadd.f32 %v1922_v13, %v3996_v58 }
 0x594   : > { %v1924_v35 = vpop.f32.mrf.mxu0  ;;  %3059 = vmatprep.mubr.msk.bf16.mxu1 %vm3376_vm1, %v3375_v1 }
 0x595   : > { %v1925_v21 = vadd.f32 %v4267_v17, %v1924_v35 }
 0x596   : > { %v3022_v16 = vpop.f32.mrf.mxu0 }
 0x597   : > { %v1963_v39 = vadd.f32 %v1925_v21, %v4005_v3 }
 0x598   : > { %v1929_v43 = vpop.f32.mrf.mxu0 }
 0x599   : > { %v1975_v19 = vpack.c.bf16 %v1963_v39, %v1962_v20  ;;  %v1930_v22 = vadd.f32 %v4267_v17, %v1929_v43 }
 0x59a   : > { %v3025_v25 = vpop.f32.mrf.mxu0 }
 0x59b   : > { %3060 = vmatmul.mubr.msk.bf16.gmra.mxu1 %vm595_vm3, %v1975_v19  ;;  %v1964_v0 = vadd.f32 %v1930_v22, %v4014_v12 }
 0x59c   : > { %v1932_v24 = vpop.f32.mrf.mxu0  ;;  %3063 = vmatprep.mubr.msk.bf16.mxu1 %vm3376_vm1, %v3375_v1 }
 0x59d   : > { %v1933_v2 = vadd.f32 %v4267_v17, %v1932_v24 }
 0x59e   : > { %v3026_v60 = vpop.f32.mrf.mxu0 }
 0x59f   : > { %v1965_v58 = vadd.f32 %v1933_v2, %v4023_v30 }
 0x5a0   : > { %v1937_v5 = vpop.f32.mrf.mxu0 }
 0x5a1   : > { %v1976_v3 = vpack.c.bf16 %v1965_v58, %v1964_v0  ;;  %v1938_v62 = vadd.f32 %v4267_v17, %v1937_v5 }
 0x5a2   : > { %v3029_v28 = vpop.f32.mrf.mxu0 }
 0x5a3   : > { %3064 = vmatmul.mubr.msk.bf16.gmra.mxu1 %vm595_vm3, %v1976_v3  ;;  %v1966_v10 = vadd.f32 %v1938_v62, %v4032_v9 }
 0x5a4   : > { %v1940_v33 = vpop.f32.mrf.mxu0  ;;  %3067 = vmatprep.mubr.msk.bf16.mxu1 %vm3376_vm1, %v3375_v1 }
 0x5a5   : > { %v1941_v49 = vadd.f32 %v4267_v17, %v1940_v33 }
 0x5a6   : > { %v3030_v36 = vpop.f32.mrf.mxu0 }
 0x5a7   : > { %v1967_v12 = vadd.f32 %v1941_v49, %v4041_v18  ;;  %v4333_v18 = vld [vmem:[%s4630_s9] ss:$0 sm:$0xff] }
 0x5a8   : > { %v1945_v14 = vpop.f32.mrf.mxu0 }
 0x5a9   : > { %v1977_v30 = vpack.c.bf16 %v1967_v12, %v1966_v10  ;;  %v1946_v32 = vadd.f32 %v4267_v17, %v1945_v14 }
 0x5aa   : > { %v3033_v42 = vpop.f32.mrf.mxu0 }
 0x5ab   : > { %3068 = vmatmul.mubr.msk.bf16.gmra.mxu1 %vm595_vm3, %v1977_v30  ;;  %v1968_v40 = vadd.f32 %v1946_v32, %v4050_v47 }
 0x5ac   : > { %v1948_v44 = vpop.f32.mrf.mxu0  ;;  %3071 = vmatprep.mubr.msk.bf16.mxu1 %vm3376_vm1, %v3375_v1 }
 0x5ad   : > { %v1949_v34 = vadd.f32 %v4267_v17, %v1948_v44 }
 0x5ae   : > { %v3034_v27 = vpop.f32.mrf.mxu0 }
 0x5af   : > { %v1969_v9 = vadd.f32 %v1949_v34, %v4059_v56 }
 0x5b1   : > { %v1978_v45 = vpack.c.bf16 %v1969_v9, %v1968_v40 }
 0x5b3   : > { %3072 = vmatmul.mubr.msk.bf16.gmra.mxu1 %vm595_vm3, %v1978_v45 }
 0x62f   : > { %v2063_v55 = vpop.f32.mrf.mxu1 }
 0x630   : > { %v4336_v51 = vadd.f32 %v4333_v18, %v2063_v55 }
 0x631   : > { %v3041_v1 = vpop.f32.mrf.mxu1 }
 0x632   : > { %v2152_v17 = vmin.f32 %v4336_v51, 20.0  ;;  %vm2134_vm3 = vcmp.gt.f32.partialorder %v4336_v51, 20.0 }
 0x633   : > { %v2066_v6 = vpop.f32.mrf.mxu1 }
 0x634   : > { %v2170_v48 = vmul.f32 1.442695, %v2152_v17  ;;  %v4340_v47 = vadd.f32 %v4333_v18, %v2066_v6 }
 0x635   : > { %v3042_v56 = vpop.f32.mrf.mxu1 }
 0x636   : > { %3221 = vpow2.f32 %v2170_v48  ;;  %v2153_v50 = vmin.f32 %v4340_v47, 20.0  ;;  %vm2135_vm13 = vcmp.gt.f32.partialorder %v4340_v47, 20.0 }
 0x638   : > { %v2172_v52 = vmul.f32 1.442695, %v2153_v50 }
 0x639   : > { %v2071_v53 = vpop.f32.mrf.mxu1 }
 0x63a   : > { %3223 = vpow2.f32 %v2172_v52  ;;  %v4344_v15 = vadd.f32 %v4333_v18, %v2071_v53 }
 0x63b   : > { %v3045_v57 = vpop.f32.mrf.mxu1 }
 0x63c   : > { %v2154_v7 = vmin.f32 %v4344_v15, 20.0  ;;  %vm2136_vm15 = vcmp.gt.f32.partialorder %v4344_v15, 20.0 }
 0x63d   : > { %v2074_v38 = vpop.f32.mrf.mxu1 }
 0x63e   : > { %v2174_v61 = vmul.f32 1.442695, %v2154_v7  ;;  %v4348_v31 = vadd.f32 %v4333_v18, %v2074_v38 }
 0x63f   : > { %v3046_v54 = vpop.f32.mrf.mxu1 }
 0x640   : > { %3225 = vpow2.f32 %v2174_v61  ;;  %v2155_v37 = vmin.f32 %v4348_v31, 20.0  ;;  %vm2137_vm2 = vcmp.gt.f32.partialorder %v4348_v31, 20.0 }
 0x641   : > { %v2079_v4 = vpop.f32.mrf.mxu1 }
 0x642   : > { %v2176_v59 = vmul.f32 1.442695, %v2155_v37  ;;  %v4352_v26 = vadd.f32 %v4333_v18, %v2079_v4 }
 0x643   : > { %v3222_v63 = vpop.eup %3221  ;;  %v3049_v46 = vpop.f32.mrf.mxu1 }
 0x644   : > { %v2206_v11 = vadd.f32 1.0, %v3222_v63  ;;  %3227 = vpow2.f32 %v2176_v59  ;;  %v2156_v23 = vmin.f32 %v4352_v26, 20.0  ;;  %v2209_v39 = vmul.f32 -0.5, %v3222_v63 }
 0x645   : > { %v2082_v8 = vpop.f32.mrf.mxu1  ;;  %v2212_v62 = vand.u32 2147483647, %v3222_v63  ;;  %vm2138_vm4 = vcmp.gt.f32.partialorder %v4352_v26, 20.0 }
 0x646   : > { %3229 = vlog2.f32 %v2206_v11  ;;  %v2178_v41 = vmul.f32 1.442695, %v2156_v23  ;;  %v4356_v13 = vadd.f32 %v4333_v18, %v2082_v8  ;;  %v2210_v60 = vadd.f32 1.0, %v2209_v39 }
 0x647   : > { %v3224_v29 = vpop.eup %3223  ;;  %v3050_v21 = vpop.f32.mrf.mxu1  ;;  %vm4376_vm1 = vcmp.lt.f32.partialorder %v2212_v62, 0.0004427343 }
 0x648   : > { %v2215_v35 = vadd.f32 1.0, %v3224_v29  ;;  %3231 = vpow2.f32 %v2178_v41  ;;  %v2157_v16 = vmin.f32 %v4356_v13, 20.0  ;;  %v2218_v5 = vmul.f32 -0.5, %v3224_v29 }
 0x649   : > { %v2211_v12 = vmul.f32 %v3222_v63, %v2210_v60  ;;  %v2221_v40 = vand.u32 2147483647, %v3224_v29  ;;  %vm2139_vm7 = vcmp.gt.f32.partialorder %v4356_v13, 20.0 }
 0x64a   : > { %3233 = vlog2.f32 %v2215_v35  ;;  %v2180_v43 = vmul.f32 1.442695, %v2157_v16  ;;  %v2219_v42 = vadd.f32 1.0, %v2218_v5 }
 0x64b   : > { %v2087_v20 = vpop.f32.mrf.mxu1  ;;  %vm2222_vm12 = vcmp.lt.f32.partialorder %v2221_v40, 0.0004427343 }
 0x64c   : > { %v4360_v19 = vadd.f32 %v4333_v18, %v2087_v20  ;;  %3235 = vpow2.f32 %v2180_v43  ;;  %v2220_v50 = vmul.f32 %v3224_v29, %v2219_v42 }
 0x64d   : > { %v3053_v25 = vpop.f32.mrf.mxu1  ;;  %v4363_v24 = vpop.eup %3225 }
 0x64e   : > { %v2158_v22 = vmin.f32 %v4360_v19, 20.0  ;;  %v2224_v0 = vadd.f32 1.0, %v4363_v24  ;;  %v2227_v6 = vmul.f32 -0.5, %v4363_v24  ;;  %vm2140_vm9 = vcmp.gt.f32.partialorder %v4360_v19, 20.0 }
 0x64f   : > { %v2090_v2 = vpop.f32.mrf.mxu1 }
 0x650   : > { %v2182_v58 = vmul.f32 1.442695, %v2158_v22  ;;  %v4367_v3 = vadd.f32 %v4333_v18, %v2090_v2  ;;  %3237 = vlog2.f32 %v2224_v0  ;;  %v2228_v59 = vadd.f32 1.0, %v2227_v6 }
 0x651   : > { %v3054_v28 = vpop.f32.mrf.mxu1  ;;  %v4369_v33 = vpop.eup %3227 }
 0x652   : > { %3239 = vpow2.f32 %v2182_v58  ;;  %v2159_v49 = vmin.f32 %v4367_v3, 20.0  ;;  %v2233_v14 = vadd.f32 1.0, %v4369_v33  ;;  %v2236_v54 = vmul.f32 -0.5, %v4369_v33 }
 0x653   : > { %v2095_v36 = vpop.f32.mrf.mxu1  ;;  %v3230_v10 = vpop.eup %3229  ;;  %v2229_v25 = vmul.f32 %v4363_v24, %v2228_v59  ;;  %vm2141_vm11 = vcmp.gt.f32.partialorder %v4367_v3, 20.0 }
 0x654   : > { %v2208_v30 = vmul.f32 0.6931472, %v3230_v10  ;;  %v2184_v32 = vmul.f32 1.442695, %v2159_v49  ;;  %v4374_v44 = vadd.f32 %v4333_v18, %v2095_v36  ;;  %3241 = vlog2.f32 %v2233_v14 }
 0x655   : > { %v3057_v34 = vpop.f32.mrf.mxu1  ;;  %v4380_v9 = vpop.eup %3231  ;;  %v2237_v16 = vadd.f32 1.0, %v2236_v54 }
 0x656   : > { %v2214_v45 = vsel %vm4376_vm1, %v2211_v12, %v2208_v30  ;;  %3243 = vpow2.f32 %v2184_v32  ;;  %v2160_v55 = vmin.f32 %v4374_v44, 20.0  ;;  %v2242_v48 = vadd.f32 1.0, %v4380_v9 }
 0x657   : > { %v2098_v1 = vpop.f32.mrf.mxu1  ;;  %v3234_v17 = vpop.eup %3233  ;;  %v2368_v57 = vsel %vm2134_vm3, %v4336_v51, %v2214_v45  ;;  %v2230_v51 = vand.u32 2147483647, %v4363_v24  ;;  %v2245_v22 = vmul.f32 -0.5, %v4380_v9  ;;  %v2238_v49 = vmul.f32 %v4369_v33, %v2237_v16 }
 0x658   : > { %v2217_v56 = vmul.f32 0.6931472, %v3234_v17  ;;  %v4390_v52 = vadd.f32 %v4333_v18, %v2098_v1  ;;  %3245 = vlog2.f32 %v2242_v48  ;;  %v2186_v7 = vmul.f32 1.442695, %v2160_v55 }
 0x659   : > { %v3058_v53 = vpop.f32.mrf.mxu1  ;;  %v4397_v38 = vpop.eup %3235  ;;  %v2386_v46 = vadd.f32 1e-06, %v2368_v57  ;;  %vm2231_vm14 = vcmp.lt.f32.partialorder %v2230_v51, 0.0004427343  ;;  %v2246_v42 = vadd.f32 1.0, %v2245_v22  ;;  %vm2142_vm1 = vcmp.gt.f32.partialorder %v4374_v44, 20.0 }
 0x65a   : > { %v2223_v61 = vsel %vm2222_vm12, %v2220_v50, %v2217_v56  ;;  %v2161_v37 = vmin.f32 %v4390_v52, 20.0  ;;  %v2251_v11 = vadd.f32 1.0, %v4397_v38  ;;  %3247 = vpow2.f32 %v2186_v7 }
 0x65b   : > { %v2103_v4 = vpop.f32.mrf.mxu1  ;;  %v2369_v63 = vsel %vm2135_vm13, %v4340_v47, %v2223_v61  ;;  %v2239_v47 = vand.u32 2147483647, %v4369_v33  ;;  %v2254_v5 = vmul.f32 -0.5, %v4397_v38  ;;  %v2248_v32 = vand.u32 2147483647, %v4380_v9 }
 0x65c   : > { %v2387_v23 = vadd.f32 1e-06, %v2369_v63  ;;  %v2188_v8 = vmul.f32 1.442695, %v2161_v37  ;;  %3249 = vlog2.f32 %v2251_v11  ;;  %v4406_v41 = vadd.f32 %v4333_v18, %v2103_v4 }
 0x65d   : > { %v3061_v29 = vpop.f32.mrf.mxu1  ;;  %v3238_v35 = vpop.eup %3237  ;;  %vm4425_vm0 = vcmp.lt.f32.partialorder %v2239_v47, 0.0004427343  ;;  %v2257_v34 = vand.u32 2147483647, %v4397_v38  ;;  %v2255_v45 = vadd.f32 1.0, %v2254_v5  ;;  %v2247_v57 = vmul.f32 %v4380_v9, %v2246_v42 }
 0x65e   : > { %v2722_v21 = vpack.c.bf16 %v2387_v23, %v2386_v46  ;;  %3251 = vpow2.f32 %v2188_v8  ;;  %v2226_v43 = vmul.f32 0.6931472, %v3238_v35  ;;  %v2162_v2 = vmin.f32 %v4406_v41, 20.0 }
 0x65f   : > { %v2106_v20 = vpop.f32.mrf.mxu1  ;;  %v4409_v39 = vpop.eup %3239  ;;  %vm4446_vm5 = vcmp.lt.f32.partialorder %v2248_v32, 0.0004427343  ;;  %v2256_v51 = vmul.f32 %v4397_v38, %v2255_v45  ;;  %vm4457_vm6 = vcmp.lt.f32.partialorder %v2257_v34, 0.0004427343  ;;  %vm2143_vm13 = vcmp.gt.f32.partialorder %v4390_v52, 20.0 }
 0x660   : > { %2723 = vst [vmem:[%s4415_s30] sm:$0xff] %v2722_v21   ;;  %v2260_v60 = vadd.f32 1.0, %v4409_v39  ;;  %v2232_v58 = vsel %vm2231_vm14, %v2229_v25, %v2226_v43  ;;  %v2190_v28 = vmul.f32 1.442695, %v2162_v2  ;;  %v4421_v62 = vadd.f32 %v4333_v18, %v2106_v20 }
 0x661   : > { %v3062_v0 = vpop.f32.mrf.mxu1  ;;  %v3242_v24 = vpop.eup %3241  ;;  %v2370_v14 = vsel %vm2136_vm15, %v4344_v15, %v2232_v58  ;;  %v2263_v48 = vmul.f32 -0.5, %v4409_v39  ;;  %v2266_v59 = vand.u32 2147483647, %v4409_v39  ;;  %vm2144_vm15 = vcmp.gt.f32.partialorder %v4406_v41, 20.0 }
 0x662   : > { %3253 = vlog2.f32 %v2260_v60  ;;  %v2235_v30 = vmul.f32 0.6931472, %v3242_v24  ;;  %v2163_v55 = vmin.f32 %v4421_v62, 20.0  ;;  %v2388_v17 = vadd.f32 1e-06, %v2370_v14 }
 0x663   : > { %v2111_v10 = vpop.f32.mrf.mxu1  ;;  %v4429_v12 = vpop.eup %3243  ;;  %3255 = vpow2.f32 %v2190_v28  ;;  %v2264_v21 = vadd.f32 1.0, %v2263_v48  ;;  %vm4479_vm8 = vcmp.lt.f32.partialorder %v2266_v59, 0.0004427343 }
 0x664   : > { %v2269_v33 = vadd.f32 1.0, %v4429_v12  ;;  %v2241_v40 = vsel %vm4425_vm0, %v2238_v49, %v2235_v30  ;;  %v4440_v15 = vadd.f32 %v4333_v18, %v2111_v10  ;;  %v2192_v7 = vmul.f32 1.442695, %v2163_v55 }
 0x665   : > { %v3065_v27 = vpop.f32.mrf.mxu1  ;;  %v3246_v1 = vpop.eup %3245  ;;  %v2371_v6 = vsel %vm2137_vm2, %v4348_v31, %v2241_v40  ;;  %v2272_v16 = vmul.f32 -0.5, %v4429_v12  ;;  %v2265_v14 = vmul.f32 %v4409_v39, %v2264_v21  ;;  %vm2145_vm2 = vcmp.gt.f32.partialorder %v4421_v62, 20.0 }
 0x666   : > { %3257 = vlog2.f32 %v2269_v33  ;;  %v2389_v50 = vadd.f32 1e-06, %v2371_v6  ;;  %v2244_v53 = vmul.f32 0.6931472, %v3246_v1  ;;  %v2164_v54 = vmin.f32 %v4440_v15, 20.0 }
 0x667   : > { %v2114_v56 = vpop.f32.mrf.mxu1  ;;  %v4451_v31 = vpop.eup %3247  ;;  %3259 = vpow2.f32 %v2192_v7  ;;  %v2273_v49 = vadd.f32 1.0, %v2272_v16 }
 0x668   : > { %v2727_v4 = vpack.c.bf16 %v2389_v50, %v2388_v17  ;;  %v2250_v63 = vsel %vm4446_vm5, %v2247_v57, %v2244_v53  ;;  %v2278_v46 = vadd.f32 1.0, %v4451_v31  ;;  %v4463_v23 = vadd.f32 %v4333_v18, %v2114_v56 }
 0x669   : > { %v3066_v37 = vpop.f32.mrf.mxu1  ;;  %v3250_v9 = vpop.eup %3249  ;;  %v2194_v47 = vmul.f32 1.442695, %v2164_v54  ;;  %v2372_v38 = vsel %vm2138_vm4, %v4352_v26, %v2250_v63  ;;  %v2275_v26 = vand.u32 2147483647, %v4429_v12  ;;  %v2281_v34 = vmul.f32 -0.5, %v4451_v31 }
 0x66a   : > { %2764 = vst [vmem:[%s4415_s30 + $0x8] sm:$0xff] %v2727_v4   ;;  %v2253_v35 = vmul.f32 0.6931472, %v3250_v9  ;;  %3261 = vlog2.f32 %v2278_v46  ;;  %v2165_v0 = vmin.f32 %v4463_v23, 20.0  ;;  %v2390_v28 = vadd.f32 1e-06, %v2372_v38 }
 0x66b   : > { %v2119_v8 = vpop.f32.mrf.mxu1  ;;  %v4465_v29 = vpop.eup %3251  ;;  %3263 = vpow2.f32 %v2194_v47  ;;  %v2274_v39 = vmul.f32 %v4429_v12, %v2273_v49  ;;  %vm2276_vm10 = vcmp.lt.f32.partialorder %v2275_v26, 0.0004427343  ;;  %v2282_v50 = vadd.f32 1.0, %v2281_v34 }
 0x66c   : > { %v2287_v20 = vadd.f32 1.0, %v4465_v29  ;;  %v4474_v43 = vadd.f32 %v4333_v18, %v2119_v8  ;;  %v2259_v22 = vsel %vm4457_vm6, %v2256_v51, %v2253_v35  ;;  %v2196_v30 = vmul.f32 1.442695, %v2165_v0 }
 0x66d   : > { %v3069_v25 = vpop.f32.mrf.mxu1  ;;  %v2373_v60 = vsel %vm2139_vm7, %v4356_v13, %v2259_v22  ;;  %v2290_v48 = vmul.f32 -0.5, %v4465_v29  ;;  %v2284_v61 = vand.u32 2147483647, %v4451_v31  ;;  %v2293_v4 = vand.u32 2147483647, %v4465_v29 }
 0x66e   : > { %3265 = vlog2.f32 %v2287_v20  ;;  %v2391_v24 = vadd.f32 1e-06, %v2373_v60  ;;  %v2166_v42 = vmin.f32 %v4474_v43, 20.0  ;;  %v2283_v35 = vmul.f32 %v4451_v31, %v2282_v50 }
 0x66f   : > { %v2122_v58 = vpop.f32.mrf.mxu1  ;;  %v3254_v5 = vpop.eup %3253  ;;  %3267 = vpow2.f32 %v2196_v30  ;;  %v2291_v9 = vadd.f32 1.0, %v2290_v48  ;;  %vm2285_vm3 = vcmp.lt.f32.partialorder %v2284_v61, 0.0004427343  ;;  %vm2294_vm12 = vcmp.lt.f32.partialorder %v2293_v4, 0.0004427343 }
 0x670   : > { %v4486_v36 = vpop.eup %3255  ;;  %v2262_v10 = vmul.f32 0.6931472, %v3254_v5  ;;  %v2732_v32 = vpack.c.bf16 %v2391_v24, %v2390_v28  ;;  %v4493_v27 = vadd.f32 %v4333_v18, %v2122_v58  ;;  %v2198_v45 = vmul.f32 1.442695, %v2166_v42 }
 0x671   : > { %v3070_v13 = vpop.f32.mrf.mxu1  ;;  %v2296_v33 = vadd.f32 1.0, %v4486_v36  ;;  %v2299_v21 = vmul.f32 -0.5, %v4486_v36  ;;  %v2292_v60 = vmul.f32 %v4465_v29, %v2291_v9  ;;  %v2302_v24 = vand.u32 2147483647, %v4486_v36 }
 0x672   : > { %v2268_v40 = vsel %vm4479_vm8, %v2265_v14, %v2262_v10  ;;  %2765 = vst [vmem:[%s4415_s30 + $0x10] sm:$0xff] %v2732_v32   ;;  %v2167_v53 = vmin.f32 %v4493_v27, 20.0  ;;  %vm2146_vm5 = vcmp.gt.f32.partialorder %v4440_v15, 20.0  ;;  %vm2147_vm7 = vcmp.gt.f32.partialorder %v4463_v23, 20.0 }
 0x673   : > { %v2127_v55 = vpop.f32.mrf.mxu1  ;;  %v3258_v1 = vpop.eup %3257  ;;  %3269 = vlog2.f32 %v2296_v33  ;;  %v2374_v17 = vsel %vm2140_vm9, %v4360_v19, %v2268_v40  ;;  %v2300_v0 = vadd.f32 1.0, %v2299_v21  ;;  %vm2303_vm14 = vcmp.lt.f32.partialorder %v2302_v24, 0.0004427343 }
 0x674   : > { %v2271_v6 = vmul.f32 0.6931472, %v3258_v1  ;;  %3271 = vpow2.f32 %v2198_v45  ;;  %v4504_v57 = vadd.f32 %v4333_v18, %v2127_v55  ;;  %v4506_v7 = vpop.eup %3259  ;;  %v2392_v54 = vadd.f32 1e-06, %v2374_v17 }
 0x675   : > { %v3073_v56 = vpop.f32.mrf.mxu1  ;;  %v2305_v63 = vadd.f32 1.0, %v4506_v7  ;;  %v2200_v51 = vmul.f32 1.442695, %v2167_v53  ;;  %v2308_v49 = vmul.f32 -0.5, %v4506_v7  ;;  %v2301_v34 = vmul.f32 %v4486_v36, %v2300_v0 }
 0x676   : > { %v2277_v12 = vsel %vm2276_vm10, %v2274_v39, %v2271_v6  ;;  %v2168_v11 = vmin.f32 %v4504_v57, 20.0  ;;  %v2311_v45 = vand.u32 2147483647, %v4506_v7  ;;  %vm2148_vm9 = vcmp.gt.f32.partialorder %v4474_v43, 20.0 }
 0x677   : > { %v2130_v19 = vpop.f32.mrf.mxu1  ;;  %v2375_v37 = vsel %vm2141_vm11, %v4367_v3, %v2277_v12  ;;  %v3262_v8 = vpop.eup %3261  ;;  %3273 = vlog2.f32 %v2305_v63  ;;  %v2309_v33 = vadd.f32 1.0, %v2308_v49  ;;  %vm2149_vm11 = vcmp.gt.f32.partialorder %v4493_v27, 20.0 }
 0x678   : > { %v2393_v59 = vadd.f32 1e-06, %v2375_v37  ;;  %v4517_v16 = vadd.f32 %v4333_v18, %v2130_v19  ;;  %v4519_v3 = vpop.eup %3263  ;;  %v2280_v38 = vmul.f32 0.6931472, %v3262_v8  ;;  %3275 = vpow2.f32 %v2200_v51 }
 0x679   : > { %v3074_v46 = vpop.f32.mrf.mxu1  ;;  %v2202_v20 = vmul.f32 1.442695, %v2168_v11  ;;  %v2314_v22 = vadd.f32 1.0, %v4519_v3  ;;  %v2317_v55 = vmul.f32 -0.5, %v4519_v3  ;;  %v2310_v6 = vmul.f32 %v4506_v7, %v2309_v33 }
 0x67a   : > { %v2737_v47 = vpack.c.bf16 %v2393_v59, %v2392_v54  ;;  %v2286_v31 = vsel %vm2285_vm3, %v2283_v35, %v2280_v38  ;;  %v2169_v58 = vmin.f32 %v4517_v16, 20.0  ;;  %vm2312_vm0 = vcmp.lt.f32.partialorder %v2311_v45, 0.0004427343 }
 0x67b   : > { %v3266_v25 = vpop.eup %3265  ;;  %3277 = vpow2.f32 %v2202_v20  ;;  %v2376_v18 = vsel %vm2142_vm1, %v4374_v44, %v2286_v31  ;;  %v2318_v48 = vadd.f32 1.0, %v2317_v55  ;;  %v2320_v61 = vand.u32 2147483647, %v4519_v3 }
 0x67c   : > { %2766 = vst [vmem:[%s4415_s30 + $0x18] sm:$0xff] %v2737_v47   ;;  %v2289_v2 = vmul.f32 0.6931472, %v3266_v25  ;;  %3279 = vlog2.f32 %v2314_v22  ;;  %v3268_v5 = vpop.eup %3267  ;;  %v2394_v10 = vadd.f32 1e-06, %v2376_v18  ;;  %vm2150_vm3 = vcmp.gt.f32.partialorder %v4504_v57, 20.0 }
 0x67d   : > { %v2323_v44 = vadd.f32 1.0, %v3268_v5  ;;  %v2204_v13 = vmul.f32 1.442695, %v2169_v58  ;;  %v2326_v56 = vmul.f32 -0.5, %v3268_v5  ;;  %v2319_v59 = vmul.f32 %v4519_v3, %v2318_v48 }
 0x67e   : > { %v2295_v26 = vsel %vm2294_vm12, %v2292_v60, %v2289_v2  ;;  %vm2321_vm4 = vcmp.lt.f32.partialorder %v2320_v61, 0.0004427343  ;;  %v2329_v11 = vand.u32 2147483647, %v3268_v5 }
 0x67f   : > { %v2377_v28 = vsel %vm2143_vm13, %v4390_v52, %v2295_v26  ;;  %3281 = vlog2.f32 %v2323_v44  ;;  %v2327_v9 = vadd.f32 1.0, %v2326_v56  ;;  %vm2151_vm13 = vcmp.gt.f32.partialorder %v4517_v16, 20.0 }
 0x680   : > { %v3270_v29 = vpop.eup %3269  ;;  %v2395_v14 = vadd.f32 1e-06, %v2377_v28  ;;  %3283 = vpow2.f32 %v2204_v13  ;;  %vm2330_vm6 = vcmp.lt.f32.partialorder %v2329_v11, 0.0004427343 }
 0x681   : > { %v4531_v30 = vpop.eup %3271  ;;  %v2298_v42 = vmul.f32 0.6931472, %v3270_v29  ;;  %v2328_v21 = vmul.f32 %v3268_v5, %v2327_v9 }
 0x682   : > { %v2742_v32 = vpack.c.bf16 %v2395_v14, %v2394_v10  ;;  %v2332_v52 = vadd.f32 1.0, %v4531_v30  ;;  %v2335_v7 = vmul.f32 -0.5, %v4531_v30  ;;  %v2338_v3 = vand.u32 2147483647, %v4531_v30 }
 0x683   : > { %v2304_v40 = vsel %vm2303_vm14, %v2301_v34, %v2298_v42 }
 0x684   : > { %2767 = vst [vmem:[%s4415_s30 + $0x20] sm:$0xff] %v2742_v32   ;;  %3285 = vlog2.f32 %v2332_v52  ;;  %v3274_v1 = vpop.eup %3273  ;;  %v2378_v17 = vsel %vm2144_vm15, %v4406_v41, %v2304_v40  ;;  %v2336_v35 = vadd.f32 1.0, %v2335_v7  ;;  %vm2339_vm8 = vcmp.lt.f32.partialorder %v2338_v3, 0.0004427343 }
 0x685   : > { %v3276_v39 = vpop.eup %3275  ;;  %v2307_v36 = vmul.f32 0.6931472, %v3274_v1  ;;  %v2396_v54 = vadd.f32 1e-06, %v2378_v17 }
 0x686   : > { %v2341_v50 = vadd.f32 1.0, %v3276_v39  ;;  %v2344_v47 = vmul.f32 -0.5, %v3276_v39  ;;  %v2337_v18 = vmul.f32 %v4531_v30, %v2336_v35 }
 0x687   : > { %v2313_v12 = vsel %vm2312_vm0, %v2310_v6, %v2307_v36 }
 0x688   : > { %v4541_v53 = vpop.eup %3277  ;;  %v2379_v37 = vsel %vm2145_vm2, %v4421_v62, %v2313_v12  ;;  %3287 = vlog2.f32 %v2341_v50  ;;  %v2345_v58 = vadd.f32 1.0, %v2344_v47 }
 0x689   : > { %v3280_v19 = vpop.eup %3279  ;;  %v2397_v41 = vadd.f32 1e-06, %v2379_v37  ;;  %v2350_v63 = vadd.f32 1.0, %v4541_v53  ;;  %v2353_v24 = vmul.f32 -0.5, %v4541_v53  ;;  %v2356_v32 = vand.u32 2147483647, %v4541_v53 }
 0x68a   : > { %v2316_v4 = vmul.f32 0.6931472, %v3280_v19  ;;  %v2346_v10 = vmul.f32 %v3276_v39, %v2345_v58 }
 0x68b   : > { %v2747_v51 = vpack.c.bf16 %v2397_v41, %v2396_v54  ;;  %3289 = vlog2.f32 %v2350_v63  ;;  %v2354_v30 = vadd.f32 1.0, %v2353_v24  ;;  %vm2357_vm1 = vcmp.lt.f32.partialorder %v2356_v32, 0.0004427343 }
 0x68c   : > { %v2322_v46 = vsel %vm2321_vm4, %v2319_v59, %v2316_v4  ;;  %v3282_v8 = vpop.eup %3281 }
 0x68d   : > { %2768 = vst [vmem:[%s4415_s30 + $0x28] sm:$0xff] %v2747_v51   ;;  %v2325_v62 = vmul.f32 0.6931472, %v3282_v8  ;;  %v3284_v38 = vpop.eup %3283  ;;  %v2380_v20 = vsel %vm2146_vm5, %v4440_v15, %v2322_v46  ;;  %v2347_v15 = vand.u32 2147483647, %v3276_v39 }
 0x68e   : > { %v2359_v31 = vadd.f32 1.0, %v3284_v38  ;;  %v2398_v26 = vadd.f32 1e-06, %v2380_v20  ;;  %v2362_v42 = vmul.f32 -0.5, %v3284_v38  ;;  %v2365_v55 = vand.u32 2147483647, %v3284_v38 }
 0x68f   : > { %v2331_v22 = vsel %vm2330_vm6, %v2328_v21, %v2325_v62  ;;  %vm2348_vm10 = vcmp.lt.f32.partialorder %v2347_v15, 0.0004427343 }
 0x690   : > { %v2381_v2 = vsel %vm2147_vm7, %v4463_v23, %v2331_v22  ;;  %3291 = vlog2.f32 %v2359_v31  ;;  %v2363_v45 = vadd.f32 1.0, %v2362_v42  ;;  %vm2366_vm12 = vcmp.lt.f32.partialorder %v2365_v55, 0.0004427343 }
 0x691   : > { %v3286_v25 = vpop.eup %3285  ;;  %v2399_v0 = vadd.f32 1e-06, %v2381_v2 }
 0x692   : > { %v2334_v60 = vmul.f32 0.6931472, %v3286_v25  ;;  %v2364_v17 = vmul.f32 %v3284_v38, %v2363_v45 }
 0x693   : > { %v2752_v5 = vpack.c.bf16 %v2399_v0, %v2398_v26 }
 0x694   : > { %v2340_v28 = vsel %vm2339_vm8, %v2337_v18, %v2334_v60 }
 0x695   : > { %v3288_v49 = vpop.eup %3287  ;;  %2769 = vst [vmem:[%s4415_s30 + $0x30] sm:$0xff] %v2752_v5   ;;  %v2382_v23 = vsel %vm2148_vm9, %v4474_v43, %v2340_v28  ;;  %v2355_v43 = vmul.f32 %v4541_v53, %v2354_v30 }
 0x696   : > { %v2343_v29 = vmul.f32 0.6931472, %v3288_v49  ;;  %v2400_v34 = vadd.f32 1e-06, %v2382_v23 }
 0x698   : > { %v3290_v14 = vpop.eup %3289  ;;  %v2349_v44 = vsel %vm2348_vm10, %v2346_v10, %v2343_v29 }
 0x699   : > { %v2383_v13 = vsel %vm2149_vm11, %v4493_v27, %v2349_v44  ;;  %v2352_v52 = vmul.f32 0.6931472, %v3290_v14 }
 0x69a   : > { %v2401_v33 = vadd.f32 1e-06, %v2383_v13 }
 0x69b   : > { %v2358_v1 = vsel %vm2357_vm1, %v2355_v43, %v2352_v52 }
 0x69c   : > { %v2757_v40 = vpack.c.bf16 %v2401_v33, %v2400_v34  ;;  %v2384_v36 = vsel %vm2150_vm3, %v4504_v57, %v2358_v1 }
 0x69d   : > { %v3292_v39 = vpop.eup %3291  ;;  %v2402_v56 = vadd.f32 1e-06, %v2384_v36 }
 0x69e   : > { %2770 = vst [vmem:[%s4415_s30 + $0x38] sm:$0xff] %v2757_v40   ;;  %v2361_v27 = vmul.f32 0.6931472, %v3292_v39 }
 0x6a0   : > { %v2367_v6 = vsel %vm2366_vm12, %v2364_v17, %v2361_v27 }
 0x6a1   : > { %v2385_v48 = vsel %vm2151_vm13, %v4517_v16, %v2367_v6 }
 0x6a2   : > { %v2403_v50 = vadd.f32 1e-06, %v2385_v48 }
 0x6a4   : > { %v2762_v57 = vpack.c.bf16 %v2403_v50, %v2402_v56 }
 0x6a6   : > { %2771 = vst [vmem:[%s4415_s30 + $0x40] sm:$0xff] %v2762_v57  }
 0x6a7   : > { %3321 = shalt.err (!%p3318_p2)
}
 0x6a8   : > { %s3322_s28 = scalar_lea.hbm %s4574_s21, 1152  ;;  %s3326_s18 = scalar_lea.hbm %s4631_s10, 2304 }
 0x6a9   : > { %p3323_p3 = scmp.ne.s32.totalorder %s4574_s21, %s3322_s28  ;;  %p3327_p8 = scmp.lt.s32.totalorder %s4574_s21, %s4631_s10 }
 0x6aa   : > { %p3328_p10 = scmp.lt.s32.totalorder %s3326_s18, %s3322_s28 }
 0x6ab   : > { %p3324_p4 = pnand %p3323_p3, %p3473_p5 }
 0x6ac   : > { %p3329_p9 = por %p3328_p10, %p3327_p8 }
 0x6ad   : > { %p3325_p7 = pneg %p3324_p4 }
 0x6af   : > { %p3330_p11 = pnand %p3329_p9, %p3325_p7 }
 0x6b1   : > { %3333 = shalt.err (!%p3330_p11)
}
 0x6b2   : > { %s3378_s25 = smov 64   ;;  %s3379_s27 = smov 4  }
 0x6b3   : > { %3080 = dma.vmem_to_hbm [thread:$0]  (%p3473_p5), %s4576_s12, 1152, %s4574_s21, %s4581_s17, %s3378_s25, %s3378_s25, %s3379_s27  }
 0x6b4 PF: > { %p3092_p12 = scmp.ge.s32.totalorder %s3372_s16, 2  ;;  %s2523_s29 = sand.u32 1, %s3360_s13  }
 0x6b5   : > { %s2524_s28 = scalar_lea.sflag [#allocation3], %s2523_s29 }
 0x6b6   : > { %p3087_p13 = pnand %p3092_p12, %p3477_p6 }
 0x6b8   : > { %p3088_p0 = pneg %p3087_p13 }
 0x6ba   : > { %3355 = dma.done.wait (%p3088_p0), %s2524_s28, 1152  }
 0x6bb   : > { %3357 = vsyncadd (%p3088_p0), %s2524_s28, 4294966144  ;;  %p21_p1 = scmp.ge.s32.totalorder %s3460_s19, 4   ;;  %s4645_s13 = smov %s3364_s14 }
 0x6bc   : > { %s4646_s14 = smov %s3368_s15  ;;  %s4647_s15 = smov %s3471_s22 }
 0x6bd   : > { %s4648_s16 = smov %s3460_s19  ;;  %23 = sbr.rel (!%p21_p1) target bundleno = 4 (0x4), region = 104 }
 0x6c2   :  { %2529 = vsyncpa [#allocation3], 1 }
 0x6c3   :  { %2531 = vsyncpa [#allocation3 + $0x1], 1 }
 0x6c4   :  { %2532 = vsyncpa [#allocation4], 1 }
 0x6c5   :  { %2534 = vsyncpa [#allocation4 + $0x1], 1 }

</bundles_post_ra>
